<compile_context>
chip_gen: v7x
topology: tpu7x:2x2x1
jax: 0.10.0
libtpu: 0.0.40
codegen_flags: <defaults>
</compile_context>

<pallas_src>
import jax
import jax.numpy as jnp
import numpy as np
from jax.experimental import pallas as pl
from jax.experimental.pallas import tpu as pltpu

BN_EPS = 1e-5


# ---------------- shared math helpers (used by kernel and by the pure-JAX reference) -------

def _sigmoid(x):
    return 1.0 / (1.0 + jnp.exp(-x))


def _softplus(x):
    # PyTorch Softplus (beta=1, threshold=20)
    return jnp.where(x > 20.0, x, jnp.log(1.0 + jnp.exp(jnp.minimum(x, 20.0))))


def _batchnorm_train(a, gamma, beta):
    # BatchNorm1d in training mode: biased batch statistics over the batch axis.
    mean = jnp.mean(a, axis=0, keepdims=True)
    var = jnp.mean((a - mean) ** 2, axis=0, keepdims=True)
    return (a - mean) * jax.lax.rsqrt(var + BN_EPS) * gamma + beta


# ------------------------------------- Pallas kernel ---------------------------------------

def bayes_filter_kernel(z0_ref, ux_ref, eps_ref, bounds_ref,
                        wz_ref, wux_ref, v1_ref, wb_ref,
                        wc_ref, v2_ref, wd_ref, bd_ref,
                        out_ref, z_scr):
    t = pl.program_id(0)

    @pl.when(t == 0)
    def _():
        z_scr[...] = z0_ref[...]                 # prime the recurrent latent state

    z = z_scr[...]                               # (B, z_dim)
    zd = z.shape[1]

    # clamp(u, u_low, u_high): x columns carry +/-3e38 bounds so one whole-tile clamp suffices.
    ux = jnp.maximum(jnp.minimum(ux_ref[...], bounds_ref[1:2, :]), bounds_ref[0:1, :])
    eps = eps_ref[...]

    # ---- stage 1: fused first Linear of q_trans([z,u]) and q_meas(x) -> (B, 2H) ----
    a = (jnp.dot(z, wz_ref[...], preferred_element_type=jnp.float32)
         + jnp.dot(ux, wux_ref[...], preferred_element_type=jnp.float32)
         + v1_ref[0:1, :])
    a = _sigmoid(a)
    a = _batchnorm_train(a, v1_ref[1:2, :], v1_ref[2:3, :])

    # ---- stage 1b: fused second Linear (block-diagonal) -> [trans | meas] (B, 2H) ----
    tm = jnp.dot(a, wb_ref[...], preferred_element_type=jnp.float32) + v1_ref[3:4, :]

    # ---- stage 2: fused first Linear of all five heads -> (B, 5H) ----
    h = jnp.dot(tm, wc_ref[...], preferred_element_type=jnp.float32) + v2_ref[0:1, :]
    h = _sigmoid(h)
    h = _batchnorm_train(h, v2_ref[1:2, :], v2_ref[2:3, :])

    # ---- stage 2b: fused second Linear (block-diagonal) -> (B, 5*z_dim) ----
    heads = jnp.dot(h, wd_ref[...], preferred_element_type=jnp.float32) + bd_ref[...]

    trans_mu = heads[:, 0 * zd:1 * zd]
    trans_sig = _softplus(heads[:, 1 * zd:2 * zd])
    trans_sigb = _softplus(heads[:, 2 * zd:3 * zd])
    meas_mu = heads[:, 3 * zd:4 * zd]
    meas_sig = _softplus(heads[:, 4 * zd:5 * zd])

    # ---- Gaussian measurement fusion (shared reciprocals, no redundant sqrt(x^2)) ----
    ms2 = meas_sig * meas_sig
    tsb2 = trans_sigb * trans_sigb
    inv_den = pl.reciprocal(ms2 + tsb2)          # approx=True possible with looser tolerance
    q_mu = (trans_mu * ms2 + meas_mu * tsb2) * inv_den
    q_sig = jnp.sqrt(ms2 * tsb2 * inv_den)
    inv_ts = pl.reciprocal(trans_sig)
    w_mu = (q_mu - trans_mu) * inv_ts
    w_sig = q_sig * inv_ts                       # == sqrt(q_sig^2 / trans_sig^2); trans_sig > 0

    z_next = q_mu + q_sig * eps                  # Normal(q_mu, q_sig).rsample with host eps

    out_ref[0, :, :] = z_next
    out_ref[1, :, :] = w_mu
    out_ref[2, :, :] = w_sig
    z_scr[...] = z_next                          # carry latent state to step t+1


# ------------------------------------- host wrappers ---------------------------------------

def bayes_filter_rollout(z0, u_seq, x_seq, eps_seq, u_low, u_high, packed):
    """T chained forward() steps inside one pallas_call (weights stay VMEM-resident).

    z0:      (B, z_dim)      initial latent state
    u_seq:   (T, B, u_dim)   control at each step (time-major)
    x_seq:   (T, B, x_dim)   measurement at each step
    eps_seq: (T, B, z_dim)   N(0,1) noise for Normal.rsample at each step
    Returns (z_seq, w_mu_seq, w_sigma_seq), each (T, B, z_dim).
    """
    wz, wux, v1, wb, wc, v2, wd, bd = packed
    T, B, u_dim = u_seq.shape
    x_dim = x_seq.shape[-1]
    zd = z0.shape[-1]
    d_ux = u_dim + x_dim
    H2 = wb.shape[0]
    H5 = wc.shape[1]

    ux_seq = jnp.concatenate([u_seq, x_seq], axis=-1).astype(jnp.float32)
    big = jnp.float32(3.0e38)
    lo = jnp.concatenate([u_low.reshape(1, u_dim).astype(jnp.float32),
                          jnp.full((1, x_dim), -big, jnp.float32)], axis=-1)
    hi = jnp.concatenate([u_high.reshape(1, u_dim).astype(jnp.float32),
                          jnp.full((1, x_dim), big, jnp.float32)], axis=-1)
    bounds = jnp.concatenate([lo, hi], axis=0)                     # (2, u_dim + x_dim)

    def const_spec(shape):
        return pl.BlockSpec(shape, lambda t: (0,) * len(shape))    # resident across steps

    out = pl.pallas_call(
        bayes_filter_kernel,
        grid=(T,),
        in_specs=[
            const_spec((B, zd)),                                   # z0 (consumed at t == 0)
            pl.BlockSpec((None, B, d_ux), lambda t: (t, 0, 0)),    # per-step [u_t, x_t]
            pl.BlockSpec((None, B, zd), lambda t: (t, 0, 0)),      # per-step eps_t
            const_spec((2, d_ux)),                                 # clamp bounds
            const_spec((zd, H2)),                                  # Wz   (z rows of stage-1)
            const_spec((d_ux, H2)),                                # Wux  ([u,x] rows of stage-1)
            const_spec((4, H2)),                                   # V1 = [b1; gamma1; beta1; b2]
            const_spec((H2, H2)),                                  # Wb   (block-diag stage-1b)
            const_spec((H2, H5)),                                  # Wc   (all head first layers)
            const_spec((3, H5)),                                   # V2 = [b1; gamma; beta]
            const_spec((H5, 5 * zd)),                              # Wd   (block-diag head L2)
            const_spec((1, 5 * zd)),                               # bd   (head L2 biases)
        ],
        out_specs=pl.BlockSpec((None, 3, B, zd), lambda t: (t, 0, 0, 0)),
        out_shape=jax.ShapeDtypeStruct((T, 3, B, zd), jnp.float32),
        scratch_shapes=[pltpu.VMEM((B, zd), jnp.float32)],         # recurrent z
        compiler_params=pltpu.CompilerParams(dimension_semantics=("arbitrary",)),
    )(z0, ux_seq, eps_seq, bounds, wz, wux, v1, wb, wc, v2, wd, bd)

    return out[:, 0], out[:, 1], out[:, 2]


def bayes_filter_forward(z, u, x, eps, u_low, u_high, packed):
    """One forward() step (BayesFilterFullyConnected.forward with x given)."""
    z_seq, wmu_seq, wsig_seq = bayes_filter_rollout(
        z, u[None], x[None], eps[None], u_low, u_high, packed)
    return z_seq[0], (wmu_seq[0], wsig_seq[0])


# ------------------------------- parameter construction ------------------------------------

def _block_diag(*blocks):
    rows = sum(b.shape[0] for b in blocks)
    cols = sum(b.shape[1] for b in blocks)
    out = jnp.zeros((rows, cols), jnp.float32)
    r = c = 0
    for b in blocks:
        out = out.at[r:r + b.shape[0], c:c + b.shape[1]].set(b)
        r += b.shape[0]
        c += b.shape[1]
    return out


def init_raw_params(key, z_dim, u_dim, x_dim, h_dim):
    """Per-module parameters in (in, out) layout, mirroring the nn.Sequential structure."""
    ks = iter(jax.random.split(key, 32))

    def lin(i, o):
        w = jax.random.normal(next(ks), (i, o), jnp.float32) / np.sqrt(i)
        b = 0.01 * jax.random.normal(next(ks), (1, o), jnp.float32)
        return w, b

    def block(i, o):
        w1, b1 = lin(i, h_dim)
        g = jnp.ones((1, h_dim), jnp.float32)
        bt = jnp.zeros((1, h_dim), jnp.float32)
        w2, b2 = lin(h_dim, o)
        return (w1, b1, g, bt, w2, b2)

    return {
        "q_trans":      block(z_dim + u_dim, h_dim),
        "q_trans_mu":   block(h_dim, z_dim),
        "q_trans_sig":  block(h_dim, z_dim),
        "q_trans_sigb": block(h_dim, z_dim),
        "q_meas":       block(x_dim, h_dim),
        "q_meas_mu":    block(h_dim, z_dim),
        "q_meas_sig":   block(h_dim, z_dim),
    }


def pack_params(rp, z_dim, u_dim, x_dim, h_dim):
    """Pack the 43 per-module tensors into 8 slabs consumed by the kernel."""
    H = h_dim
    zeros2 = lambda r, c: jnp.zeros((r, c), jnp.float32)

    tW1, tb1, tg, tbt, tW2, tb2 = rp["q_trans"]
    mW1, mb1, mg, mbt, mW2, mb2 = rp["q_meas"]

    # stage 1: columns 0:H feed the q_trans branch, H:2H the q_meas branch.
    Wz = jnp.concatenate([tW1[:z_dim], zeros2(z_dim, H)], axis=1)                    # (z, 2H)
    Wux = jnp.concatenate([
        jnp.concatenate([tW1[z_dim:], zeros2(u_dim, H)], axis=1),
        jnp.concatenate([zeros2(x_dim, H), mW1], axis=1)], axis=0)                   # (u+x, 2H)
    V1 = jnp.concatenate([
        jnp.concatenate([tb1, mb1], axis=1),
        jnp.concatenate([tg, mg], axis=1),
        jnp.concatenate([tbt, mbt], axis=1),
        jnp.concatenate([tb2, mb2], axis=1)], axis=0)                                # (4, 2H)
    Wb = _block_diag(tW2, mW2)                                                       # (2H, 2H)

    heads = [rp["q_trans_mu"], rp["q_trans_sig"], rp["q_trans_sigb"],
             rp["q_meas_mu"], rp["q_meas_sig"]]
    Wc = jnp.concatenate([
        jnp.concatenate([heads[0][0], heads[1][0], heads[2][0], zeros2(H, 2 * H)], axis=1),
        jnp.concatenate([zeros2(H, 3 * H), heads[3][0], heads[4][0]], axis=1)],
        axis=0)                                                                      # (2H, 5H)
    V2 = jnp.concatenate([
        jnp.concatenate([h[1] for h in heads], axis=1),
        jnp.concatenate([h[2] for h in heads], axis=1),
        jnp.concatenate([h[3] for h in heads], axis=1)], axis=0)                     # (3, 5H)
    Wd = _block_diag(*[h[4] for h in heads])                                         # (5H, 5z)
    bd = jnp.concatenate([h[5] for h in heads], axis=1)                              # (1, 5z)
    return (Wz, Wux, V1, Wb, Wc, V2, Wd, bd)


# -------------------------------- pure-JAX reference (check) -------------------------------

def _mlp_block(h, W1, b1, g, bt, W2, b2, softplus=False):
    a = _sigmoid(jnp.dot(h, W1) + b1)
    a = _batchnorm_train(a, g, bt)
    o = jnp.dot(a, W2) + b2
    return _softplus(o) if softplus else o


def reference_forward_step(z, u, x, eps, u_low, u_high, rp):
    u = jnp.maximum(jnp.minimum(u, u_high), u_low)
    zu = jnp.concatenate([z, u], axis=1)
    trans = _mlp_block(zu, *rp["q_trans"])
    trans_mu = _mlp_block(trans, *rp["q_trans_mu"])
    trans_sig = _mlp_block(trans, *rp["q_trans_sig"], softplus=True)
    trans_sigb = _mlp_block(trans, *rp["q_trans_sigb"], softplus=True)
    meas = _mlp_block(x, *rp["q_meas"])
    meas_mu = _mlp_block(meas, *rp["q_meas_mu"])
    meas_sig = _mlp_block(meas, *rp["q_meas_sig"], softplus=True)
    ms2, tsb2 = meas_sig ** 2, trans_sigb ** 2
    q_mu = (trans_mu * ms2 + meas_mu * tsb2) / (ms2 + tsb2)
    q_sig = jnp.sqrt(ms2 * tsb2 / (ms2 + tsb2))
    w_mu = (q_mu - trans_mu) / trans_sig
    w_sig = jnp.sqrt(q_sig ** 2 / trans_sig ** 2)
    return q_mu + q_sig * eps, w_mu, w_sig


def reference_rollout(z0, u_seq, x_seq, eps_seq, u_low, u_high, rp):
    z = z0
    zs, wms, wss = [], [], []
    for t in range(u_seq.shape[0]):
        z, w_mu, w_sig = reference_forward_step(
            z, u_seq[t], x_seq[t], eps_seq[t], u_low, u_high, rp)
        zs.append(z), wms.append(w_mu), wss.append(w_sig)
    return jnp.stack(zs), jnp.stack(wms), jnp.stack(wss)


# --------------------------------------- main -----------------------------------------------

if __name__ == "__main__":
    B, z_dim, u_dim, x_dim, h_dim, T = 8, 3, 2, 4, 128, 4

    key = jax.random.PRNGKey(0)
    kz, ku, kx, ke, kp = jax.random.split(key, 5)

    z0 = jax.random.normal(kz, (B, z_dim), jnp.float32)
    u_seq = jax.random.normal(ku, (T, B, u_dim), jnp.float32)
    x_seq = jax.random.normal(kx, (T, B, x_dim), jnp.float32)
    eps_seq = jax.random.normal(ke, (T, B, z_dim), jnp.float32)   # Normal.rsample noise
    u_low = jnp.full((1, u_dim), -1.0, jnp.float32)
    u_high = jnp.full((1, u_dim), 1.0, jnp.float32)

    raw = init_raw_params(kp, z_dim, u_dim, x_dim, h_dim)
    packed = pack_params(raw, z_dim, u_dim, x_dim, h_dim)

    # T chained forward() steps in one kernel (weights DMA'd once, VMEM-resident).
    z_seq, wmu_seq, wsig_seq = jax.block_until_ready(
        jax.jit(bayes_filter_rollout)(z0, u_seq, x_seq, eps_seq, u_low, u_high, packed))

    z_ref, wmu_ref, wsig_ref = reference_rollout(
        z0, u_seq, x_seq, eps_seq, u_low, u_high, raw)

    # Rollout tolerance is slightly looser than single-step: errors compound through the
    # z recurrence over T steps.
    np.testing.assert_allclose(np.asarray(z_seq), np.asarray(z_ref), rtol=5e-3, atol=5e-3)
    np.testing.assert_allclose(np.asarray(wmu_seq), np.asarray(wmu_ref), rtol=5e-3, atol=5e-3)
    np.testing.assert_allclose(np.asarray(wsig_seq), np.asarray(wsig_ref), rtol=5e-3, atol=5e-3)

    # Single forward() call (module.forward semantics), T=1 grid.
    z1, (wmu1, wsig1) = jax.block_until_ready(
        bayes_filter_forward(z0, u_seq[0], x_seq[0], eps_seq[0], u_low, u_high, packed))
    np.testing.assert_allclose(np.asarray(z1), np.asarray(z_ref[0]), rtol=2e-3, atol=2e-3)
    np.testing.assert_allclose(np.asarray(wmu1), np.asarray(wmu_ref[0]), rtol=2e-3, atol=2e-3)
    np.testing.assert_allclose(np.asarray(wsig1), np.asarray(wsig_ref[0]), rtol=2e-3, atol=2e-3)

    print("KERNEL_OK")
</pallas_src>

<mosaic_0001>
module attributes {stable_mosaic.version = 11 : i64} {
  func.func @bayes_filter_kernel(%arg0: i32, %arg1: memref<8x3xf32, #tpu.memory_space<vmem>>, %arg2: memref<1x8x6xf32, #tpu.memory_space<vmem>>, %arg3: memref<1x8x3xf32, #tpu.memory_space<vmem>>, %arg4: memref<2x6xf32, #tpu.memory_space<vmem>>, %arg5: memref<3x256xf32, #tpu.memory_space<vmem>>, %arg6: memref<6x256xf32, #tpu.memory_space<vmem>>, %arg7: memref<4x256xf32, #tpu.memory_space<vmem>>, %arg8: memref<256x256xf32, #tpu.memory_space<vmem>>, %arg9: memref<256x640xf32, #tpu.memory_space<vmem>>, %arg10: memref<3x640xf32, #tpu.memory_space<vmem>>, %arg11: memref<640x15xf32, #tpu.memory_space<vmem>>, %arg12: memref<1x15xf32, #tpu.memory_space<vmem>>, %arg13: memref<1x3x8x3xf32, #tpu.memory_space<vmem>>, %arg14: memref<8x3xf32, #tpu.memory_space<vmem>>) attributes {dimension_semantics = [#tpu.dimension_semantics<arbitrary>], iteration_bounds = array<i64: 4>, scalar_prefetch = 0 : i64, scratch_operands = 1 : i64, tpu.core_type = #tpu.core_type<tc>, window_params = [{pipeline_mode = #tpu.pipeline_mode<synchronous>, transform_indices = @transform_0, window_bounds = array<i64: 8, 3>}, {transform_indices = @transform_1, window_bounds = array<i64: 1, 8, 6>}, {transform_indices = @transform_2, window_bounds = array<i64: 1, 8, 3>}, {pipeline_mode = #tpu.pipeline_mode<synchronous>, transform_indices = @transform_3, window_bounds = array<i64: 2, 6>}, {pipeline_mode = #tpu.pipeline_mode<synchronous>, transform_indices = @transform_4, window_bounds = array<i64: 3, 256>}, {pipeline_mode = #tpu.pipeline_mode<synchronous>, transform_indices = @transform_5, window_bounds = array<i64: 6, 256>}, {pipeline_mode = #tpu.pipeline_mode<synchronous>, transform_indices = @transform_6, window_bounds = array<i64: 4, 256>}, {pipeline_mode = #tpu.pipeline_mode<synchronous>, transform_indices = @transform_7, window_bounds = array<i64: 256, 256>}, {pipeline_mode = #tpu.pipeline_mode<synchronous>, transform_indices = @transform_8, window_bounds = array<i64: 256, 640>}, {pipeline_mode = #tpu.pipeline_mode<synchronous>, transform_indices = @transform_9, window_bounds = array<i64: 3, 640>}, {pipeline_mode = #tpu.pipeline_mode<synchronous>, transform_indices = @transform_10, window_bounds = array<i64: 640, 15>}, {pipeline_mode = #tpu.pipeline_mode<synchronous>, transform_indices = @transform_11, window_bounds = array<i64: 1, 15>}, {transform_indices = @transform_12, window_bounds = array<i64: 1, 3, 8, 3>}]} {
    %c0_i32 = arith.constant 0 : i32
    %0 = arith.cmpi eq, %arg0, %c0_i32 : i32
    %1 = arith.extui %0 : i1 to i32
    %c0_i32_0 = arith.constant 0 : i32
    %2 = arith.cmpi ne, %1, %c0_i32_0 : i32
    scf.if %2 {
      %c0_78 = arith.constant 0 : index
      %c0_79 = arith.constant 0 : index
      %158 = vector.load %arg1[%c0_78, %c0_79] : memref<8x3xf32, #tpu.memory_space<vmem>>, vector<8x3xf32>
      %c0_80 = arith.constant 0 : index
      %c0_81 = arith.constant 0 : index
      %159 = vector.load %arg14[%c0_80, %c0_81] : memref<8x3xf32, #tpu.memory_space<vmem>>, vector<8x3xf32>
      tpu.vector_store %arg14[%c0_80, %c0_81], %158 {strides = array<i32>} : memref<8x3xf32, #tpu.memory_space<vmem>>, vector<8x3xf32>,
    } else {
    }
    %c0 = arith.constant 0 : index
    %c0_1 = arith.constant 0 : index
    %3 = vector.load %arg14[%c0, %c0_1] : memref<8x3xf32, #tpu.memory_space<vmem>>, vector<8x3xf32>
    %c0_2 = arith.constant 0 : index
    %c0_3 = arith.constant 0 : index
    %c0_4 = arith.constant 0 : index
    %4 = vector.load %arg2[%c0_2, %c0_3, %c0_4] : memref<1x8x6xf32, #tpu.memory_space<vmem>>, vector<1x8x6xf32>
    %5 = vector.shape_cast %4 : vector<1x8x6xf32> to vector<8x6xf32>
    %c1 = arith.constant 1 : index
    %c0_5 = arith.constant 0 : index
    %6 = vector.load %arg4[%c1, %c0_5] : memref<2x6xf32, #tpu.memory_space<vmem>>, vector<1x6xf32>
    %7 = vector.broadcast %6 : vector<1x6xf32> to vector<8x6xf32>
    %8 = arith.minimumf %5, %7 : vector<8x6xf32>
    %c0_6 = arith.constant 0 : index
    %c0_7 = arith.constant 0 : index
    %9 = vector.load %arg4[%c0_6, %c0_7] : memref<2x6xf32, #tpu.memory_space<vmem>>, vector<1x6xf32>
    %10 = vector.broadcast %9 : vector<1x6xf32> to vector<8x6xf32>
    %11 = arith.maximumf %8, %10 : vector<8x6xf32>
    %c0_8 = arith.constant 0 : index
    %c0_9 = arith.constant 0 : index
    %c0_10 = arith.constant 0 : index
    %12 = vector.load %arg3[%c0_8, %c0_9, %c0_10] : memref<1x8x3xf32, #tpu.memory_space<vmem>>, vector<1x8x3xf32>
    %13 = vector.shape_cast %12 : vector<1x8x3xf32> to vector<8x3xf32>
    %c0_11 = arith.constant 0 : index
    %c0_12 = arith.constant 0 : index
    %14 = vector.load %arg5[%c0_11, %c0_12] : memref<3x256xf32, #tpu.memory_space<vmem>>, vector<3x256xf32>
    %cst = arith.constant dense<0.000000e+00> : vector<8x256xf32>
    %15 = tpu.matmul %3, %14, %cst {dimension_numbers = #tpu.dot_dimension_numbers<[1], [0], [0], [1], [0, 0, 1, 1], [], []>} : vector<8x3xf32>, vector<3x256xf32>, vector<8x256xf32> -> vector<8x256xf32>
    %c0_13 = arith.constant 0 : index
    %c0_14 = arith.constant 0 : index
    %16 = vector.load %arg6[%c0_13, %c0_14] : memref<6x256xf32, #tpu.memory_space<vmem>>, vector<6x256xf32>
    %cst_15 = arith.constant dense<0.000000e+00> : vector<8x256xf32>
    %17 = tpu.matmul %11, %16, %cst_15 {dimension_numbers = #tpu.dot_dimension_numbers<[1], [0], [0], [1], [0, 0, 1, 1], [], []>} : vector<8x6xf32>, vector<6x256xf32>, vector<8x256xf32> -> vector<8x256xf32>
    %18 = arith.addf %15, %17 : vector<8x256xf32>
    %c0_16 = arith.constant 0 : index
    %c0_17 = arith.constant 0 : index
    %19 = vector.load %arg7[%c0_16, %c0_17] : memref<4x256xf32, #tpu.memory_space<vmem>>, vector<1x256xf32>
    %20 = vector.broadcast %19 : vector<1x256xf32> to vector<8x256xf32>
    %21 = arith.addf %18, %20 : vector<8x256xf32>
    %cst_18 = arith.constant 0.000000e+00 : f32
    %22 = vector.broadcast %cst_18 : f32 to vector<8x256xf32>
    %23 = arith.subf %22, %21 : vector<8x256xf32>
    %24 = math.exp %23 : vector<8x256xf32>
    %cst_19 = arith.constant 1.000000e+00 : f32
    %25 = vector.broadcast %cst_19 : f32 to vector<8x256xf32>
    %26 = arith.addf %25, %24 : vector<8x256xf32>
    %cst_20 = arith.constant 1.000000e+00 : f32
    %27 = vector.broadcast %cst_20 : f32 to vector<8x256xf32>
    %28 = arith.divf %27, %26 : vector<8x256xf32>
    %c1_21 = arith.constant 1 : index
    %c0_22 = arith.constant 0 : index
    %29 = vector.load %arg7[%c1_21, %c0_22] : memref<4x256xf32, #tpu.memory_space<vmem>>, vector<1x256xf32>
    %c2 = arith.constant 2 : index
    %c0_23 = arith.constant 0 : index
    %30 = vector.load %arg7[%c2, %c0_23] : memref<4x256xf32, #tpu.memory_space<vmem>>, vector<1x256xf32>
    %cst_24 = arith.constant dense<0.000000e+00> : vector<256xf32>
    %31 = vector.multi_reduction <add>, %28, %cst_24 [0] : vector<8x256xf32> to vector<256xf32>
    %32 = vector.shape_cast %31 : vector<256xf32> to vector<1x256xf32>
    %cst_25 = arith.constant 8.000000e+00 : f32
    %33 = vector.broadcast %cst_25 : f32 to vector<1x256xf32>
    %34 = arith.divf %32, %33 : vector<1x256xf32>
    %35 = vector.broadcast %34 : vector<1x256xf32> to vector<8x256xf32>
    %36 = arith.subf %28, %35 : vector<8x256xf32>
    %37 = arith.mulf %36, %36 : vector<8x256xf32>
    %cst_26 = arith.constant dense<0.000000e+00> : vector<256xf32>
    %38 = vector.multi_reduction <add>, %37, %cst_26 [0] : vector<8x256xf32> to vector<256xf32>
    %39 = vector.shape_cast %38 : vector<256xf32> to vector<1x256xf32>
    %cst_27 = arith.constant 8.000000e+00 : f32
    %40 = vector.broadcast %cst_27 : f32 to vector<1x256xf32>
    %41 = arith.divf %39, %40 : vector<1x256xf32>
    %42 = vector.broadcast %34 : vector<1x256xf32> to vector<8x256xf32>
    %43 = arith.subf %28, %42 : vector<8x256xf32>
    %cst_28 = arith.constant 9.99999974E-6 : f32
    %44 = vector.broadcast %cst_28 : f32 to vector<1x256xf32>
    %45 = arith.addf %41, %44 : vector<1x256xf32>
    %46 = math.rsqrt %45 : vector<1x256xf32>
    %47 = vector.broadcast %46 : vector<1x256xf32> to vector<8x256xf32>
    %48 = arith.mulf %43, %47 : vector<8x256xf32>
    %49 = vector.broadcast %29 : vector<1x256xf32> to vector<8x256xf32>
    %50 = arith.mulf %48, %49 : vector<8x256xf32>
    %51 = vector.broadcast %30 : vector<1x256xf32> to vector<8x256xf32>
    %52 = arith.addf %50, %51 : vector<8x256xf32>
    %c0_29 = arith.constant 0 : index
    %c0_30 = arith.constant 0 : index
    %53 = vector.load %arg8[%c0_29, %c0_30] : memref<256x256xf32, #tpu.memory_space<vmem>>, vector<256x256xf32>
    %cst_31 = arith.constant dense<0.000000e+00> : vector<8x256xf32>
    %54 = tpu.matmul %52, %53, %cst_31 {dimension_numbers = #tpu.dot_dimension_numbers<[1], [0], [0], [1], [0, 0, 1, 1], [], []>} : vector<8x256xf32>, vector<256x256xf32>, vector<8x256xf32> -> vector<8x256xf32>
    %c3 = arith.constant 3 : index
    %c0_32 = arith.constant 0 : index
    %55 = vector.load %arg7[%c3, %c0_32] : memref<4x256xf32, #tpu.memory_space<vmem>>, vector<1x256xf32>
    %56 = vector.broadcast %55 : vector<1x256xf32> to vector<8x256xf32>
    %57 = arith.addf %54, %56 : vector<8x256xf32>
    %c0_33 = arith.constant 0 : index
    %c0_34 = arith.constant 0 : index
    %58 = vector.load %arg9[%c0_33, %c0_34] : memref<256x640xf32, #tpu.memory_space<vmem>>, vector<256x640xf32>
    %cst_35 = arith.constant dense<0.000000e+00> : vector<8x640xf32>
    %59 = tpu.matmul %57, %58, %cst_35 {dimension_numbers = #tpu.dot_dimension_numbers<[1], [0], [0], [1], [0, 0, 1, 1], [], []>} : vector<8x256xf32>, vector<256x640xf32>, vector<8x640xf32> -> vector<8x640xf32>
    %c0_36 = arith.constant 0 : index
    %c0_37 = arith.constant 0 : index
    %60 = vector.load %arg10[%c0_36, %c0_37] : memref<3x640xf32, #tpu.memory_space<vmem>>, vector<1x640xf32>
    %61 = vector.broadcast %60 : vector<1x640xf32> to vector<8x640xf32>
    %62 = arith.addf %59, %61 : vector<8x640xf32>
    %cst_38 = arith.constant 0.000000e+00 : f32
    %63 = vector.broadcast %cst_38 : f32 to vector<8x640xf32>
    %64 = arith.subf %63, %62 : vector<8x640xf32>
    %65 = math.exp %64 : vector<8x640xf32>
    %cst_39 = arith.constant 1.000000e+00 : f32
    %66 = vector.broadcast %cst_39 : f32 to vector<8x640xf32>
    %67 = arith.addf %66, %65 : vector<8x640xf32>
    %cst_40 = arith.constant 1.000000e+00 : f32
    %68 = vector.broadcast %cst_40 : f32 to vector<8x640xf32>
    %69 = arith.divf %68, %67 : vector<8x640xf32>
    %c1_41 = arith.constant 1 : index
    %c0_42 = arith.constant 0 : index
    %70 = vector.load %arg10[%c1_41, %c0_42] : memref<3x640xf32, #tpu.memory_space<vmem>>, vector<1x640xf32>
    %c2_43 = arith.constant 2 : index
    %c0_44 = arith.constant 0 : index
    %71 = vector.load %arg10[%c2_43, %c0_44] : memref<3x640xf32, #tpu.memory_space<vmem>>, vector<1x640xf32>
    %cst_45 = arith.constant dense<0.000000e+00> : vector<640xf32>
    %72 = vector.multi_reduction <add>, %69, %cst_45 [0] : vector<8x640xf32> to vector<640xf32>
    %73 = vector.shape_cast %72 : vector<640xf32> to vector<1x640xf32>
    %cst_46 = arith.constant 8.000000e+00 : f32
    %74 = vector.broadcast %cst_46 : f32 to vector<1x640xf32>
    %75 = arith.divf %73, %74 : vector<1x640xf32>
    %76 = vector.broadcast %75 : vector<1x640xf32> to vector<8x640xf32>
    %77 = arith.subf %69, %76 : vector<8x640xf32>
    %78 = arith.mulf %77, %77 : vector<8x640xf32>
    %cst_47 = arith.constant dense<0.000000e+00> : vector<640xf32>
    %79 = vector.multi_reduction <add>, %78, %cst_47 [0] : vector<8x640xf32> to vector<640xf32>
    %80 = vector.shape_cast %79 : vector<640xf32> to vector<1x640xf32>
    %cst_48 = arith.constant 8.000000e+00 : f32
    %81 = vector.broadcast %cst_48 : f32 to vector<1x640xf32>
    %82 = arith.divf %80, %81 : vector<1x640xf32>
    %83 = vector.broadcast %75 : vector<1x640xf32> to vector<8x640xf32>
    %84 = arith.subf %69, %83 : vector<8x640xf32>
    %cst_49 = arith.constant 9.99999974E-6 : f32
    %85 = vector.broadcast %cst_49 : f32 to vector<1x640xf32>
    %86 = arith.addf %82, %85 : vector<1x640xf32>
    %87 = math.rsqrt %86 : vector<1x640xf32>
    %88 = vector.broadcast %87 : vector<1x640xf32> to vector<8x640xf32>
    %89 = arith.mulf %84, %88 : vector<8x640xf32>
    %90 = vector.broadcast %70 : vector<1x640xf32> to vector<8x640xf32>
    %91 = arith.mulf %89, %90 : vector<8x640xf32>
    %92 = vector.broadcast %71 : vector<1x640xf32> to vector<8x640xf32>
    %93 = arith.addf %91, %92 : vector<8x640xf32>
    %c0_50 = arith.constant 0 : index
    %c0_51 = arith.constant 0 : index
    %94 = vector.load %arg11[%c0_50, %c0_51] : memref<640x15xf32, #tpu.memory_space<vmem>>, vector<640x15xf32>
    %cst_52 = arith.constant dense<0.000000e+00> : vector<8x15xf32>
    %95 = tpu.matmul %93, %94, %cst_52 {dimension_numbers = #tpu.dot_dimension_numbers<[1], [0], [0], [1], [0, 0, 1, 1], [], []>} : vector<8x640xf32>, vector<640x15xf32>, vector<8x15xf32> -> vector<8x15xf32>
    %c0_53 = arith.constant 0 : index
    %c0_54 = arith.constant 0 : index
    %96 = vector.load %arg12[%c0_53, %c0_54] : memref<1x15xf32, #tpu.memory_space<vmem>>, vector<1x15xf32>
    %97 = vector.broadcast %96 : vector<1x15xf32> to vector<8x15xf32>
    %98 = arith.addf %95, %97 : vector<8x15xf32>
    %99 = vector.extract_strided_slice %98 {offsets = [0, 0], sizes = [8, 3], strides = [1, 1]} : vector<8x15xf32> to vector<8x3xf32>
    %100 = vector.extract_strided_slice %98 {offsets = [0, 3], sizes = [8, 3], strides = [1, 1]} : vector<8x15xf32> to vector<8x3xf32>
    %cst_55 = arith.constant 2.000000e+01 : f32
    %101 = vector.broadcast %cst_55 : f32 to vector<8x3xf32>
    %102 = arith.cmpf ogt, %100, %101 : vector<8x3xf32>
    %cst_56 = arith.constant 2.000000e+01 : f32
    %103 = vector.broadcast %cst_56 : f32 to vector<8x3xf32>
    %104 = arith.minimumf %100, %103 : vector<8x3xf32>
    %105 = math.exp %104 : vector<8x3xf32>
    %cst_57 = arith.constant 1.000000e+00 : f32
    %106 = vector.broadcast %cst_57 : f32 to vector<8x3xf32>
    %107 = arith.addf %106, %105 : vector<8x3xf32>
    %108 = math.log %107 : vector<8x3xf32>
    %109 = arith.select %102, %100, %108 : vector<8x3xi1>, vector<8x3xf32>
    %110 = vector.extract_strided_slice %98 {offsets = [0, 6], sizes = [8, 3], strides = [1, 1]} : vector<8x15xf32> to vector<8x3xf32>
    %cst_58 = arith.constant 2.000000e+01 : f32
    %111 = vector.broadcast %cst_58 : f32 to vector<8x3xf32>
    %112 = arith.cmpf ogt, %110, %111 : vector<8x3xf32>
    %cst_59 = arith.constant 2.000000e+01 : f32
    %113 = vector.broadcast %cst_59 : f32 to vector<8x3xf32>
    %114 = arith.minimumf %110, %113 : vector<8x3xf32>
    %115 = math.exp %114 : vector<8x3xf32>
    %cst_60 = arith.constant 1.000000e+00 : f32
    %116 = vector.broadcast %cst_60 : f32 to vector<8x3xf32>
    %117 = arith.addf %116, %115 : vector<8x3xf32>
    %118 = math.log %117 : vector<8x3xf32>
    %119 = arith.select %112, %110, %118 : vector<8x3xi1>, vector<8x3xf32>
    %120 = vector.extract_strided_slice %98 {offsets = [0, 9], sizes = [8, 3], strides = [1, 1]} : vector<8x15xf32> to vector<8x3xf32>
    %121 = vector.extract_strided_slice %98 {offsets = [0, 12], sizes = [8, 3], strides = [1, 1]} : vector<8x15xf32> to vector<8x3xf32>
    %cst_61 = arith.constant 2.000000e+01 : f32
    %122 = vector.broadcast %cst_61 : f32 to vector<8x3xf32>
    %123 = arith.cmpf ogt, %121, %122 : vector<8x3xf32>
    %cst_62 = arith.constant 2.000000e+01 : f32
    %124 = vector.broadcast %cst_62 : f32 to vector<8x3xf32>
    %125 = arith.minimumf %121, %124 : vector<8x3xf32>
    %126 = math.exp %125 : vector<8x3xf32>
    %cst_63 = arith.constant 1.000000e+00 : f32
    %127 = vector.broadcast %cst_63 : f32 to vector<8x3xf32>
    %128 = arith.addf %127, %126 : vector<8x3xf32>
    %129 = math.log %128 : vector<8x3xf32>
    %130 = arith.select %123, %121, %129 : vector<8x3xi1>, vector<8x3xf32>
    %131 = arith.mulf %130, %130 : vector<8x3xf32>
    %132 = arith.mulf %119, %119 : vector<8x3xf32>
    %133 = arith.addf %131, %132 : vector<8x3xf32>
    %134 = tpu.reciprocal %133 : vector<8x3xf32> -> vector<8x3xf32>
    %135 = arith.mulf %99, %131 : vector<8x3xf32>
    %136 = arith.mulf %120, %132 : vector<8x3xf32>
    %137 = arith.addf %135, %136 : vector<8x3xf32>
    %138 = arith.mulf %137, %134 : vector<8x3xf32>
    %139 = arith.mulf %131, %132 : vector<8x3xf32>
    %140 = arith.mulf %139, %134 : vector<8x3xf32>
    %141 = math.sqrt %140 : vector<8x3xf32>
    %142 = tpu.reciprocal %109 : vector<8x3xf32> -> vector<8x3xf32>
    %143 = arith.subf %138, %99 : vector<8x3xf32>
    %144 = arith.mulf %143, %142 : vector<8x3xf32>
    %145 = arith.mulf %141, %142 : vector<8x3xf32>
    %146 = arith.mulf %141, %13 : vector<8x3xf32>
    %147 = arith.addf %138, %146 : vector<8x3xf32>
    %c0_64 = arith.constant 0 : index
    %c0_65 = arith.constant 0 : index
    %c0_66 = arith.constant 0 : index
    %c0_67 = arith.constant 0 : index
    %148 = vector.load %arg13[%c0_64, %c0_65, %c0_66, %c0_67] : memref<1x3x8x3xf32, #tpu.memory_space<vmem>>, vector<1x1x8x3xf32>
    %149 = vector.shape_cast %148 : vector<1x1x8x3xf32> to vector<8x3xf32>
    %150 = vector.shape_cast %147 : vector<8x3xf32> to vector<1x1x8x3xf32>
    tpu.vector_store %arg13[%c0_64, %c0_65, %c0_66, %c0_67], %150 {strides = array<i32>} : memref<1x3x8x3xf32, #tpu.memory_space<vmem>>, vector<1x1x8x3xf32>,
    %c0_68 = arith.constant 0 : index
    %c1_69 = arith.constant 1 : index
    %c0_70 = arith.constant 0 : index
    %c0_71 = arith.constant 0 : index
    %151 = vector.load %arg13[%c0_68, %c1_69, %c0_70, %c0_71] : memref<1x3x8x3xf32, #tpu.memory_space<vmem>>, vector<1x1x8x3xf32>
    %152 = vector.shape_cast %151 : vector<1x1x8x3xf32> to vector<8x3xf32>
    %153 = vector.shape_cast %144 : vector<8x3xf32> to vector<1x1x8x3xf32>
    tpu.vector_store %arg13[%c0_68, %c1_69, %c0_70, %c0_71], %153 {strides = array<i32>} : memref<1x3x8x3xf32, #tpu.memory_space<vmem>>, vector<1x1x8x3xf32>,
    %c0_72 = arith.constant 0 : index
    %c2_73 = arith.constant 2 : index
    %c0_74 = arith.constant 0 : index
    %c0_75 = arith.constant 0 : index
    %154 = vector.load %arg13[%c0_72, %c2_73, %c0_74, %c0_75] : memref<1x3x8x3xf32, #tpu.memory_space<vmem>>, vector<1x1x8x3xf32>
    %155 = vector.shape_cast %154 : vector<1x1x8x3xf32> to vector<8x3xf32>
    %156 = vector.shape_cast %145 : vector<8x3xf32> to vector<1x1x8x3xf32>
    tpu.vector_store %arg13[%c0_72, %c2_73, %c0_74, %c0_75], %156 {strides = array<i32>} : memref<1x3x8x3xf32, #tpu.memory_space<vmem>>, vector<1x1x8x3xf32>,
    %c0_76 = arith.constant 0 : index
    %c0_77 = arith.constant 0 : index
    %157 = vector.load %arg14[%c0_76, %c0_77] : memref<8x3xf32, #tpu.memory_space<vmem>>, vector<8x3xf32>
    tpu.vector_store %arg14[%c0_76, %c0_77], %147 {strides = array<i32>} : memref<8x3xf32, #tpu.memory_space<vmem>>, vector<8x3xf32>,
    return
  }
  func.func @transform_0(%arg0: i32) -> (i32, i32) {
    %c0_i32 = arith.constant 0 : i32
    %c0_i32_0 = arith.constant 0 : i32
    %c0_i32_1 = arith.constant 0 : i32
    return %c0_i32, %c0_i32_0 : i32, i32
  }
  func.func @transform_1(%arg0: i32) -> (i32, i32, i32) {
    %c0_i32 = arith.constant 0 : i32
    %c0_i32_0 = arith.constant 0 : i32
    %c0_i32_1 = arith.constant 0 : i32
    return %arg0, %c0_i32, %c0_i32_0 : i32, i32, i32
  }
  func.func @transform_2(%arg0: i32) -> (i32, i32, i32) {
    %c0_i32 = arith.constant 0 : i32
    %c0_i32_0 = arith.constant 0 : i32
    %c0_i32_1 = arith.constant 0 : i32
    return %arg0, %c0_i32, %c0_i32_0 : i32, i32, i32
  }
  func.func @transform_3(%arg0: i32) -> (i32, i32) {
    %c0_i32 = arith.constant 0 : i32
    %c0_i32_0 = arith.constant 0 : i32
    %c0_i32_1 = arith.constant 0 : i32
    return %c0_i32, %c0_i32_0 : i32, i32
  }
  func.func @transform_4(%arg0: i32) -> (i32, i32) {
    %c0_i32 = arith.constant 0 : i32
    %c0_i32_0 = arith.constant 0 : i32
    %c0_i32_1 = arith.constant 0 : i32
    return %c0_i32, %c0_i32_0 : i32, i32
  }
  func.func @transform_5(%arg0: i32) -> (i32, i32) {
    %c0_i32 = arith.constant 0 : i32
    %c0_i32_0 = arith.constant 0 : i32
    %c0_i32_1 = arith.constant 0 : i32
    return %c0_i32, %c0_i32_0 : i32, i32
  }
  func.func @transform_6(%arg0: i32) -> (i32, i32) {
    %c0_i32 = arith.constant 0 : i32
    %c0_i32_0 = arith.constant 0 : i32
    %c0_i32_1 = arith.constant 0 : i32
    return %c0_i32, %c0_i32_0 : i32, i32
  }
  func.func @transform_7(%arg0: i32) -> (i32, i32) {
    %c0_i32 = arith.constant 0 : i32
    %c0_i32_0 = arith.constant 0 : i32
    %c0_i32_1 = arith.constant 0 : i32
    return %c0_i32, %c0_i32_0 : i32, i32
  }
  func.func @transform_8(%arg0: i32) -> (i32, i32) {
    %c0_i32 = arith.constant 0 : i32
    %c0_i32_0 = arith.constant 0 : i32
    %c0_i32_1 = arith.constant 0 : i32
    return %c0_i32, %c0_i32_0 : i32, i32
  }
  func.func @transform_9(%arg0: i32) -> (i32, i32) {
    %c0_i32 = arith.constant 0 : i32
    %c0_i32_0 = arith.constant 0 : i32
    %c0_i32_1 = arith.constant 0 : i32
    return %c0_i32, %c0_i32_0 : i32, i32
  }
  func.func @transform_10(%arg0: i32) -> (i32, i32) {
    %c0_i32 = arith.constant 0 : i32
    %c0_i32_0 = arith.constant 0 : i32
    %c0_i32_1 = arith.constant 0 : i32
    return %c0_i32, %c0_i32_0 : i32, i32
  }
  func.func @transform_11(%arg0: i32) -> (i32, i32) {
    %c0_i32 = arith.constant 0 : i32
    %c0_i32_0 = arith.constant 0 : i32
    %c0_i32_1 = arith.constant 0 : i32
    return %c0_i32, %c0_i32_0 : i32, i32
  }
  func.func @transform_12(%arg0: i32) -> (i32, i32, i32, i32) {
    %c0_i32 = arith.constant 0 : i32
    %c0_i32_0 = arith.constant 0 : i32
    %c0_i32_1 = arith.constant 0 : i32
    %c0_i32_2 = arith.constant 0 : i32
    return %arg0, %c0_i32, %c0_i32_0, %c0_i32_1 : i32, i32, i32, i32
  }
}

</mosaic_0001>

<bundles_post_ra>
// kernel: bayes_filter_rollout.1
= control target key start
LH: loop header
LB: loop body
LE: loop exit
PB: predicated region body
PF: predicated region fallthrough
CT: control target
= control target key end

     0   :  { %17 = vsyncpa [#allocation4], 0  ;;  %s2617_s21 = smov 0   ;;  %s3248_s0 = inlined_call_operand.vmem [shape: f32[8,3], index: 0, kind: input, shape index: {}]   ;;  %s3249_s1 = inlined_call_operand.vmem [shape: f32[4,8,6], index: 1, kind: input, shape index: {}]   ;;  %s3250_s2 = inlined_call_operand.vmem [shape: f32[4,8,3], index: 2, kind: input, shape index: {}]   ;;  %s3251_s3 = inlined_call_operand.vmem [shape: f32[2,6], index: 3, kind: input, shape index: {}]   ;;  %s3252_s4 = inlined_call_operand.vmem [shape: f32[3,256], index: 4, kind: input, shape index: {}]   ;;  %s3253_s5 = inlined_call_operand.vmem [shape: f32[6,256], index: 5, kind: input, shape index: {}]   ;;  %s3254_s6 = inlined_call_operand.vmem [shape: f32[4,256], index: 6, kind: input, shape index: {}]   ;;  %s3255_s7 = inlined_call_operand.vmem [shape: f32[256,256], index: 7, kind: input, shape index: {}]   ;;  %s3256_s8 = inlined_call_operand.hbm [shape: f32[256,640], index: 8, kind: input, shape index: {}]   ;;  %s3257_s9 = inlined_call_operand.vmem [shape: f32[3,640], index: 9, kind: input, shape index: {}]   ;;  %s3258_s10 = inlined_call_operand.vmem [shape: f32[640,15], index: 10, kind: input, shape index: {}]   ;;  %s3259_s11 = inlined_call_operand.vmem [shape: f32[1,15], index: 11, kind: input, shape index: {}]   ;;  %s3260_s12 = inlined_call_operand.vmem [shape: f32[4,3,8,3], index: 12, kind: output, shape index: {}]  }
   0x1 LB: > { %s2623_s22 = sadd.s32 4294967295, %s2537_s21   ;;  %p1916_p0 = scmp.ge.s32.totalorder %s2537_s21, 1  ;;  %s2537_s21 = sphi %s2617_s21, %s23_s21  }
   0x2   : > { %p316_p1 = scmp.lt.s32.totalorder %s2537_s21, 5  ;;  %s2539_s23 = smov [#allocation3]  }
   0x3   : > { %s346_s24 = sshll.u32 %s2539_s23, 4  ;;  %p3261_p4 = scmp.eq.s32.totalorder %s2623_s22, 0  ;;  %s347_s24 = int_to_ptr.vmem [resolvable:$true] %s346_s24 }
   0x4   : > { %p2628_p3 = pnand %p1916_p0, %p316_p1  ;;  %s2499_s29 = scalar_lea.hbm %s3256_s8, 20480 }
   0x5   : > { %p2500_p7 = scmp.ne.s32.totalorder %s3256_s8, %s2499_s29  ;;  %p2506_p11 = scmp.lt.u32.totalorder %s2499_s29, %s3256_s8 }
   0x6   : > { %s3263_s25 = scalar_select %p2628_p3, 1, 0 }
   0x7   : > { %p2419_p5 = pneg %p2628_p3 }
   0x9   : > { %p2637_p6 = pnand %p3261_p4, %p2419_p5 }
   0xb   : > { %p2501_p8 = pneg %p2637_p6 }
   0xd   : > { %p2502_p9 = pnand %p2501_p8, %p2500_p7 }
   0xf   : > { %p2503_p10 = pneg %p2502_p9 }
  0x11   : > { %p2508_p12 = pnand %p2506_p11, %p2503_p10 }
  0x13   : > { %2511 = shalt.err (!%p2508_p12)
}
  0x14   : > { %s2512_s16 = scalar_lea.vmem %s347_s24, 20480  ;;  %p2520_p5 = scmp.lt.s32.totalorder %s347_s24, %s347_s24 }
  0x15   : > { %p2513_p13 = scmp.ne.s32.totalorder %s347_s24, %s2512_s16  ;;  %p2521_p2 = scmp.lt.s32.totalorder %s2512_s16, %s2512_s16 }
  0x17   : > { %p2515_p0 = pnand %p2513_p13, %p2501_p8  ;;  %p2522_p4 = por %p2521_p2, %p2520_p5 }
  0x19   : > { %p2516_p1 = pneg %p2515_p0 }
  0x1b   : > { %p2523_p3 = pnand %p2522_p4, %p2516_p1 }
  0x1d   : > { %2526 = shalt.err (!%p2523_p3)
}
  0x1e   : > { %s2540_s17 = smov 640   ;;  %s2541_s18 = smov 40  }
  0x1f   : > { %2422 = dma.hbm_to_vmem [thread:$0]  (!%p2637_p6), %s3256_s8, 20480, %s347_s24, [#allocation4], %s2540_s17, %s2540_s17, %s2541_s18  }
  0x20   : > { %p3265_p7 = scmp.ne.s32.totalorder %s3263_s25, 0 }
  0x21   : > { %p3266_p9 = scmp.eq.s32.totalorder (!%p3265_p7), %s2623_s22, 0 }
  0x22   : > { %385 = sbr.rel (%p3265_p7) target bundleno = 1413 (0x585), region = 68 }
  0x29   : > { %2532 = dma.done.wait (%p3266_p9), [#allocation4], 20480   ;;  %p3267_p8 = pmov %p3266_p9 }
  0x2a   : > { %p430_p2 = scmp.lt.s32.totalorder %s2623_s22, 3  ;;  %p3268_p3 = scmp.ne.s32.totalorder %s2623_s22, 0 }
  0x2b   : > { %2534 = vsyncadd (%p3267_p8), [#allocation4], 4294946816  ;;  %v447_v0 = vld [vmem:[%s3248_s0] sm:$0xff] (!%p3268_p3)  ;;  %vm448_vm0 = vcmask (!%p3268_p3), 23552  }
  0x2c   : > { %s431_s23 = scalar_select %p430_p2, %s2623_s22, 3 }
  0x2d   : > { %446 = sbr.rel (%p3268_p3) target bundleno = 52 (0x34), region = 76  ;;  %449 = vst.msk [vmem:[#allocation2] sm:$0xff] (!%p3268_p3), %vm448_vm0, %v447_v0 }
  0x2e   : > { %s1921_s27 = sshll.u32 %s431_s23, 3  ;;  %s2414_s28 = smul.u32 24, %s431_s23 }
  0x2f   : > { %s433_s30 = scalar_lea.vmem %s3249_s1, %s1921_s27  ;;  %s2671_s25 = scalar_lea.vmem %s3250_s2, %s1921_s27 }
  0x30   : > { %s2676_s16 = scalar_lea.vmem %s3260_s12, %s2414_s28 }
  0x34 PF: > { %v467_v1 = vld [vmem:[%s3253_s5 + $0x8] sm:$0x3f]  ;;  %vm472_vm1 = vcmask 1045504   ;;  %v465_v2 = vld [vmem:[%s3252_s4] sm:$0x77]  ;;  %vm556_vm2 = vcmask 1042432  }
  0x35   : > { %1927 = vmatprep.subr.msk.mxu1 %vm472_vm1, %v467_v1  ;;  %v551_v3 = vcombine.high %v465_v2, %v465_v2  ;;  %v466_v4 = vld [vmem:[%s3253_s5] sm:$0x3f]  ;;  %v2542_v7 = vmov 0.0   ;;  %vm552_vm3 = vcmask 23552   ;;  %vm468_vm4 = vcmask 48128   ;;  %v728_v12 = vld [vmem:[%s3255_s7 + $0x8] sm:$0xff] }
  0x36   : > { %v451_v5 = vld [vmem:[%s433_s30] sm:$0xff]  ;;  %1928 = vmatpush1.msk.msra.mxu1 %vm472_vm1, %v466_v4  ;;  %543 = vmatprep.mubr.f32.mxu1 %v2542_v7  ;;  %v730_v13 = vld [vmem:[%s3255_s7 + $0x18] sm:$0xff]  ;;  %v729_v16 = vld [vmem:[%s3255_s7 + $0x10] sm:$0xff]  ;;  %vm2544_vm5 = vmmov 0   ;;  %s2545_s15 = smov 12   ;;  %s2547_s19 = smov 3  }
  0x37   : > { %v1925_v6 = vld [vmem:[%s3251_s3 + $0x1] ss:$0 sm:$0xff]  ;;  %v1926_v9 = vld [vmem:[%s3251_s3] ss:$0 sm:$0xff]  ;;  %1930 = vmatprep.subr.msk.mxu0 %vm556_vm2, %v551_v3  ;;  %625 = vmatprep.mubr.f32.mxu0 %v2542_v7  ;;  %v2100_v14 = vpack.c.bf16 %v730_v13, %v728_v12  ;;  %v732_v18 = vld [vmem:[%s3255_s7 + $0x28] sm:$0xff]  ;;  %s2548_s20 = smov 116  }
  0x38   : > { %v457_v8 = vmin.f32 %v451_v5, %v1925_v6  ;;  %v450_v10 = vld [vmem:[#allocation2] sm:$0xff]  ;;  %1931 = vmatpush1.msk.msra.mxu0 %vm556_vm2, %v465_v2  ;;  %v734_v19 = vld [vmem:[%s3255_s7 + $0x38] sm:$0xff]  ;;  %v733_v22 = vld [vmem:[%s3255_s7 + $0x30] sm:$0xff]  ;;  %s2549_s23 = smov 9   ;;  %s2550_s27 = smov 119  }
  0x39   : > { %1932 = vmatmul.mubr.msk.f32.vlgmr.msra.gmra.mrb[0].mxu0 %vm552_vm3, %v450_v10  ;;  %v727_v15 = vld [vmem:[%s3255_s7] sm:$0xff]  ;;  %2101 = vmatprep.subr.bf16.mxu1 %v2100_v14  ;;  %v2104_v21 = vpack.c.bf16 %v734_v19, %v732_v18  ;;  %v736_v23 = vld [vmem:[%s3255_s7 + $0x48] sm:$0xff]  ;;  %v738_v24 = vld [vmem:[%s3255_s7 + $0x58] sm:$0xff]  ;;  %s2551_s22 = smov 125  }
  0x3a   : > { %v463_v11 = vmax.f32 %v457_v8, %v1926_v9  ;;  %v2102_v17 = vpack.c.bf16 %v729_v16, %v727_v15  ;;  %v731_v20 = vld [vmem:[%s3255_s7 + $0x20] sm:$0xff]  ;;  %v2108_v26 = vpack.c.bf16 %v738_v24, %v736_v23  ;;  %v737_v28 = vld [vmem:[%s3255_s7 + $0x50] sm:$0xff]  ;;  %v740_v29 = vld [vmem:[%s3255_s7 + $0x68] sm:$0xff] }
  0x3b   : > { %v2106_v25 = vpack.c.bf16 %v733_v22, %v731_v20  ;;  %v735_v27 = vld [vmem:[%s3255_s7 + $0x40] sm:$0xff]  ;;  %v742_v30 = vld [vmem:[%s3255_s7 + $0x78] sm:$0xff]  ;;  %v741_v34 = vld [vmem:[%s3255_s7 + $0x70] sm:$0xff] }
  0x3c   : > { %1929 = vmatmul.mubr.msk.f32.vlgmr.msra.gmra.mrb[0].mxu1 %vm468_vm4, %v463_v11  ;;  %v2110_v31 = vpack.c.bf16 %v737_v28, %v735_v27  ;;  %v2112_v32 = vpack.c.bf16 %v742_v30, %v740_v29  ;;  %v739_v33 = vld [vmem:[%s3255_s7 + $0x60] sm:$0xff]  ;;  %v744_v35 = vld [vmem:[%s3255_s7 + $0x88] sm:$0xff]  ;;  %v746_v36 = vld [vmem:[%s3255_s7 + $0x98] sm:$0xff] }
  0x3d   : > { %2103 = vmatpush1.bf16.msra.mxu1 %v2102_v17  ;;  %v2114_v37 = vpack.c.bf16 %v741_v34, %v739_v33  ;;  %v2116_v38 = vpack.c.bf16 %v746_v36, %v744_v35  ;;  %v743_v39 = vld [vmem:[%s3255_s7 + $0x80] sm:$0xff]  ;;  %v745_v40 = vld [vmem:[%s3255_s7 + $0x90] sm:$0xff]  ;;  %v748_v41 = vld [vmem:[%s3255_s7 + $0xa8] sm:$0xff] }
  0x3e   : > { %2105 = vmatprep.subr.bf16.mxu1 %v2104_v21  ;;  %v750_v42 = vld [vmem:[%s3255_s7 + $0xb8] sm:$0xff]  ;;  %v2118_v43 = vpack.c.bf16 %v745_v40, %v743_v39  ;;  %v747_v45 = vld [vmem:[%s3255_s7 + $0xa0] sm:$0xff]  ;;  %v749_v46 = vld [vmem:[%s3255_s7 + $0xb0] sm:$0xff] }
  0x3f   : > { %v2120_v44 = vpack.c.bf16 %v750_v42, %v748_v41  ;;  %v752_v47 = vld [vmem:[%s3255_s7 + $0xc8] sm:$0xff]  ;;  %v754_v48 = vld [vmem:[%s3255_s7 + $0xd8] sm:$0xff]  ;;  %v2122_v49 = vpack.c.bf16 %v749_v46, %v747_v45  ;;  %v751_v51 = vld [vmem:[%s3255_s7 + $0xc0] sm:$0xff] }
  0x40   : > { %v2124_v50 = vpack.c.bf16 %v754_v48, %v752_v47  ;;  %v753_v52 = vld [vmem:[%s3255_s7 + $0xd0] sm:$0xff]  ;;  %v756_v53 = vld [vmem:[%s3255_s7 + $0xe8] sm:$0xff]  ;;  %v758_v54 = vld [vmem:[%s3255_s7 + $0xf8] sm:$0xff] }
  0x41   : > { %2107 = vmatpush1.bf16.msra.mxu1 %v2106_v25  ;;  %v2126_v55 = vpack.c.bf16 %v753_v52, %v751_v51  ;;  %v2128_v56 = vpack.c.bf16 %v758_v54, %v756_v53  ;;  %v755_v57 = vld [vmem:[%s3255_s7 + $0xe0] sm:$0xff]  ;;  %v757_v58 = vld [vmem:[%s3255_s7 + $0xf0] sm:$0xff]  ;;  %v760_v59 = vld [vmem:[%s3255_s7 + $0x108] sm:$0xff] }
  0x42   : > { %2109 = vmatprep.subr.bf16.mxu1 %v2108_v26  ;;  %v762_v60 = vld [vmem:[%s3255_s7 + $0x118] sm:$0xff]  ;;  %v2130_v61 = vpack.c.bf16 %v757_v58, %v755_v57  ;;  %v759_v63 = vld [vmem:[%s3255_s7 + $0x100] sm:$0xff]  ;;  %v761_v0 = vld [vmem:[%s3255_s7 + $0x110] sm:$0xff] }
  0x43   : > { %v2132_v62 = vpack.c.bf16 %v762_v60, %v760_v59  ;;  %v764_v1 = vld [vmem:[%s3255_s7 + $0x128] sm:$0xff]  ;;  %v766_v2 = vld [vmem:[%s3255_s7 + $0x138] sm:$0xff]  ;;  %v2134_v3 = vpack.c.bf16 %v761_v0, %v759_v63  ;;  %v763_v5 = vld [vmem:[%s3255_s7 + $0x120] sm:$0xff] }
  0x44   : > { %v2136_v4 = vpack.c.bf16 %v766_v2, %v764_v1  ;;  %v765_v6 = vld [vmem:[%s3255_s7 + $0x130] sm:$0xff]  ;;  %v768_v8 = vld [vmem:[%s3255_s7 + $0x148] sm:$0xff]  ;;  %v770_v9 = vld [vmem:[%s3255_s7 + $0x158] sm:$0xff] }
  0x45   : > { %2111 = vmatpush1.bf16.msra.mxu1 %v2110_v31  ;;  %v2138_v10 = vpack.c.bf16 %v765_v6, %v763_v5  ;;  %v2140_v11 = vpack.c.bf16 %v770_v9, %v768_v8  ;;  %v767_v12 = vld [vmem:[%s3255_s7 + $0x140] sm:$0xff]  ;;  %v769_v13 = vld [vmem:[%s3255_s7 + $0x150] sm:$0xff]  ;;  %v772_v14 = vld [vmem:[%s3255_s7 + $0x168] sm:$0xff] }
  0x46   : > { %2113 = vmatprep.subr.bf16.mxu1 %v2112_v32  ;;  %v774_v15 = vld [vmem:[%s3255_s7 + $0x178] sm:$0xff]  ;;  %v2142_v16 = vpack.c.bf16 %v769_v13, %v767_v12  ;;  %v771_v18 = vld [vmem:[%s3255_s7 + $0x160] sm:$0xff]  ;;  %v773_v19 = vld [vmem:[%s3255_s7 + $0x170] sm:$0xff] }
  0x47   : > { %v2144_v17 = vpack.c.bf16 %v774_v15, %v772_v14  ;;  %v776_v20 = vld [vmem:[%s3255_s7 + $0x188] sm:$0xff]  ;;  %v778_v21 = vld [vmem:[%s3255_s7 + $0x198] sm:$0xff]  ;;  %v2146_v22 = vpack.c.bf16 %v773_v19, %v771_v18  ;;  %v775_v24 = vld [vmem:[%s3255_s7 + $0x180] sm:$0xff] }
  0x48   : > { %v2148_v23 = vpack.c.bf16 %v778_v21, %v776_v20  ;;  %v777_v25 = vld [vmem:[%s3255_s7 + $0x190] sm:$0xff]  ;;  %v780_v26 = vld [vmem:[%s3255_s7 + $0x1a8] sm:$0xff]  ;;  %v782_v27 = vld [vmem:[%s3255_s7 + $0x1b8] sm:$0xff] }
  0x49   : > { %2115 = vmatpush1.bf16.msra.mxu1 %v2114_v37  ;;  %v2150_v28 = vpack.c.bf16 %v777_v25, %v775_v24  ;;  %v2152_v29 = vpack.c.bf16 %v782_v27, %v780_v26  ;;  %v779_v30 = vld [vmem:[%s3255_s7 + $0x1a0] sm:$0xff]  ;;  %v781_v31 = vld [vmem:[%s3255_s7 + $0x1b0] sm:$0xff]  ;;  %v784_v32 = vld [vmem:[%s3255_s7 + $0x1c8] sm:$0xff] }
  0x4a   : > { %2117 = vmatprep.subr.bf16.mxu1 %v2116_v38  ;;  %v786_v33 = vld [vmem:[%s3255_s7 + $0x1d8] sm:$0xff]  ;;  %v2154_v34 = vpack.c.bf16 %v781_v31, %v779_v30  ;;  %v783_v36 = vld [vmem:[%s3255_s7 + $0x1c0] sm:$0xff]  ;;  %v785_v37 = vld [vmem:[%s3255_s7 + $0x1d0] sm:$0xff] }
  0x4b   : > { %v2156_v35 = vpack.c.bf16 %v786_v33, %v784_v32  ;;  %v788_v38 = vld [vmem:[%s3255_s7 + $0x1e8] sm:$0xff]  ;;  %v790_v39 = vld [vmem:[%s3255_s7 + $0x1f8] sm:$0xff]  ;;  %v2158_v40 = vpack.c.bf16 %v785_v37, %v783_v36  ;;  %v787_v42 = vld [vmem:[%s3255_s7 + $0x1e0] sm:$0xff]  ;;  %v634_v33 = vlaneseq }
  0x4c   : > { %v2160_v41 = vpack.c.bf16 %v790_v39, %v788_v38  ;;  %v876_v45 = vld [vmem:[#allocation3 + $0x8] sm:$0xff]  ;;  %v881_v46 = vld [vmem:[#allocation3 + $0x30] sm:$0xff]  ;;  %v875_v47 = vld [vmem:[#allocation3] sm:$0xff] }
  0x4d   : > { %2119 = vmatpush1.bf16.msra.mxu1 %v2118_v43  ;;  %v789_v43 = vld [vmem:[%s3255_s7 + $0x1f0] sm:$0xff]  ;;  %v2164_v48 = vpack.c.bf16 %v881_v46, %v876_v45  ;;  %v883_v51 = vld [vmem:[#allocation3 + $0x40] sm:$0xff]  ;;  %v886_v54 = vld [vmem:[#allocation3 + $0x58] sm:$0xff] }
  0x4e   : > { %2121 = vmatprep.subr.bf16.mxu1 %v2120_v44  ;;  %v2162_v44 = vpack.c.bf16 %v789_v43, %v787_v42  ;;  %v890_v57 = vld [vmem:[#allocation3 + $0x78] sm:$0xff]  ;;  %v896_v60 = vld [vmem:[#allocation3 + $0xa8] sm:$0xff]  ;;  %v895_v63 = vld [vmem:[#allocation3 + $0xa0] sm:$0xff] }
  0x4f   : > { %2165 = vmatprep.subr.bf16.mxu0 %v2164_v48  ;;  %v900_v0 = vld [vmem:[#allocation3 + $0xc8] sm:$0xff]  ;;  %v906_v2 = vld [vmem:[#allocation3 + $0xf8] sm:$0xff]  ;;  %v955_v36 = vld [vmem:[#allocation3 + $0x280] sm:$0xff] }
  0x50   : > { %v2174_v1 = vpack.c.bf16 %v900_v0, %v895_v63  ;;  %v910_v6 = vld [vmem:[#allocation3 + $0x118] sm:$0xff]  ;;  %v916_v9 = vld [vmem:[#allocation3 + $0x148] sm:$0xff]  ;;  %v971_v42 = vld [vmem:[#allocation3 + $0x300] sm:$0xff] }
  0x51   : > { %2123 = vmatpush1.bf16.msra.mxu1 %v2122_v49  ;;  %v880_v49 = vld [vmem:[#allocation3 + $0x28] sm:$0xff]  ;;  %v926_v15 = vld [vmem:[#allocation3 + $0x198] sm:$0xff]  ;;  %v965_v43 = vld [vmem:[#allocation3 + $0x2d0] sm:$0xff] }
  0x52   : > { %2125 = vmatprep.subr.bf16.mxu1 %v2124_v50  ;;  %v878_v50 = vld [vmem:[#allocation3 + $0x18] sm:$0xff]  ;;  %v2166_v52 = vpack.c.bf16 %v880_v49, %v875_v47  ;;  %v920_v13 = vld [vmem:[#allocation3 + $0x168] sm:$0xff]  ;;  %v981_v49 = vld [vmem:[#allocation3 + $0x350] sm:$0xff] }
  0x53   : > { %v2228_v53 = vpack.c.bf16 %v883_v51, %v878_v50  ;;  %v930_v19 = vld [vmem:[#allocation3 + $0x1b8] sm:$0xff]  ;;  %v936_v21 = vld [vmem:[#allocation3 + $0x1e8] sm:$0xff]  ;;  %v975_v50 = vld [vmem:[#allocation3 + $0x320] sm:$0xff] }
  0x54   : > { %2167 = vmatpush1.bf16.msra.mxu0 %v2166_v52  ;;  %v940_v25 = vld [vmem:[#allocation3 + $0x208] sm:$0xff]  ;;  %v946_v27 = vld [vmem:[#allocation3 + $0x238] sm:$0xff] }
  0x55   : > { %2127 = vmatpush1.bf16.msra.mxu1 %v2126_v55  ;;  %v891_v55 = vld [vmem:[#allocation3 + $0x80] sm:$0xff]  ;;  %v950_v31 = vld [vmem:[#allocation3 + $0x258] sm:$0xff]  ;;  %v960_v38 = vld [vmem:[#allocation3 + $0x2a8] sm:$0xff] }
  0x56   : > { %2129 = vmatprep.subr.bf16.mxu1 %v2128_v56  ;;  %v885_v56 = vld [vmem:[#allocation3 + $0x50] sm:$0xff]  ;;  %v2168_v58 = vpack.c.bf16 %v891_v55, %v886_v54  ;;  %v2198_v39 = vpack.c.bf16 %v960_v38, %v955_v36  ;;  %v970_v45 = vld [vmem:[#allocation3 + $0x2f8] sm:$0xff]  ;;  %v976_v48 = vld [vmem:[#allocation3 + $0x328] sm:$0xff] }
  0x57   : > { %v2170_v59 = vpack.c.bf16 %v890_v57, %v885_v56  ;;  %v2202_v46 = vpack.c.bf16 %v970_v45, %v965_v43  ;;  %v632_v51 = vld [vmem:[%s3254_s6] ss:$4 sm:$0x3]  ;;  %v980_v54 = vld [vmem:[#allocation3 + $0x348] sm:$0xff] }
  0x58   : > { %2169 = vmatprep.subr.bf16.mxu0 %v2168_v58  ;;  %v2206_v55 = vpack.c.bf16 %v980_v54, %v975_v50  ;;  %v986_v58 = vld [vmem:[#allocation3 + $0x378] sm:$0xff] }
  0x59   : > { %2131 = vmatpush1.bf16.msra.mxu1 %v2130_v61  ;;  %v901_v61 = vld [vmem:[#allocation3 + $0xd0] sm:$0xff]  ;;  %2171 = vmatpush1.bf16.msra.mxu0 %v2170_v59  ;;  %v991_v59 = vld [vmem:[#allocation3 + $0x3a0] sm:$0xff] }
  0x5a   : > { %2133 = vmatprep.subr.bf16.mxu1 %v2132_v62  ;;  %v2172_v62 = vpack.c.bf16 %v901_v61, %v896_v60  ;;  %v985_v60 = vld [vmem:[#allocation3 + $0x370] sm:$0xff]  ;;  %v2208_v0 = vpack.c.bf16 %v991_v59, %v986_v58 }
  0x5c   : > { %2173 = vmatprep.subr.bf16.mxu0 %v2172_v62 }
  0x5d   : > { %2135 = vmatpush1.bf16.msra.mxu1 %v2134_v3  ;;  %v911_v3 = vld [vmem:[#allocation3 + $0x120] sm:$0xff]  ;;  %2175 = vmatpush1.bf16.msra.mxu0 %v2174_v1  ;;  %v990_v1 = vld [vmem:[#allocation3 + $0x398] sm:$0xff] }
  0x5e   : > { %2137 = vmatprep.subr.bf16.mxu1 %v2136_v4  ;;  %v905_v4 = vld [vmem:[#allocation3 + $0xf0] sm:$0xff]  ;;  %v2176_v5 = vpack.c.bf16 %v911_v3, %v906_v2 }
  0x5f   : > { %v2178_v8 = vpack.c.bf16 %v910_v6, %v905_v4 }
  0x60   : > { %2177 = vmatprep.subr.bf16.mxu0 %v2176_v5  ;;  %v2210_v5 = vpack.c.bf16 %v990_v1, %v985_v60 }
  0x61   : > { %2139 = vmatpush1.bf16.msra.mxu1 %v2138_v10  ;;  %v921_v10 = vld [vmem:[#allocation3 + $0x170] sm:$0xff]  ;;  %2179 = vmatpush1.bf16.msra.mxu0 %v2178_v8  ;;  %v996_v8 = vld [vmem:[#allocation3 + $0x3c8] sm:$0xff] }
  0x62   : > { %2141 = vmatprep.subr.bf16.mxu1 %v2140_v11  ;;  %v915_v11 = vld [vmem:[#allocation3 + $0x140] sm:$0xff]  ;;  %v2180_v12 = vpack.c.bf16 %v921_v10, %v916_v9  ;;  %v1001_v9 = vld [vmem:[#allocation3 + $0x3f0] sm:$0xff] }
  0x63   : > { %v2182_v14 = vpack.c.bf16 %v920_v13, %v915_v11  ;;  %v995_v10 = vld [vmem:[#allocation3 + $0x3c0] sm:$0xff]  ;;  %v1000_v13 = vld [vmem:[#allocation3 + $0x3e8] sm:$0xff] }
  0x64   : > { %2181 = vmatprep.subr.bf16.mxu0 %v2180_v12  ;;  %v2212_v12 = vpack.c.bf16 %v1001_v9, %v996_v8 }
  0x65   : > { %2143 = vmatpush1.bf16.msra.mxu1 %v2142_v16  ;;  %v931_v16 = vld [vmem:[#allocation3 + $0x1c0] sm:$0xff]  ;;  %2183 = vmatpush1.bf16.msra.mxu0 %v2182_v14 }
  0x66   : > { %2145 = vmatprep.subr.bf16.mxu1 %v2144_v17  ;;  %v925_v17 = vld [vmem:[#allocation3 + $0x190] sm:$0xff]  ;;  %v2184_v18 = vpack.c.bf16 %v931_v16, %v926_v15  ;;  %v2214_v16 = vpack.c.bf16 %v1000_v13, %v995_v10 }
  0x67   : > { %v2186_v20 = vpack.c.bf16 %v930_v19, %v925_v17  ;;  %v1011_v19 = vld [vmem:[#allocation3 + $0x440] sm:$0xff] }
  0x68   : > { %2185 = vmatprep.subr.bf16.mxu0 %v2184_v18  ;;  %v1006_v18 = vld [vmem:[#allocation3 + $0x418] sm:$0xff] }
  0x69   : > { %2147 = vmatpush1.bf16.msra.mxu1 %v2146_v22  ;;  %v941_v22 = vld [vmem:[#allocation3 + $0x210] sm:$0xff]  ;;  %2187 = vmatpush1.bf16.msra.mxu0 %v2186_v20 }
  0x6a   : > { %2149 = vmatprep.subr.bf16.mxu1 %v2148_v23  ;;  %v935_v23 = vld [vmem:[#allocation3 + $0x1e0] sm:$0xff]  ;;  %v2188_v24 = vpack.c.bf16 %v941_v22, %v936_v21  ;;  %v1005_v20 = vld [vmem:[#allocation3 + $0x410] sm:$0xff]  ;;  %v2216_v22 = vpack.c.bf16 %v1011_v19, %v1006_v18 }
  0x6b   : > { %v2190_v26 = vpack.c.bf16 %v940_v25, %v935_v23  ;;  %v1010_v23 = vld [vmem:[#allocation3 + $0x438] sm:$0xff]  ;;  %v1016_v25 = vld [vmem:[#allocation3 + $0x468] sm:$0xff] }
  0x6c   : > { %2189 = vmatprep.subr.bf16.mxu0 %v2188_v24  ;;  %v2218_v24 = vpack.c.bf16 %v1010_v23, %v1005_v20  ;;  %v882_v23 = vld [vmem:[#allocation3 + $0x38] sm:$0xff] }
  0x6d   : > { %2151 = vmatpush1.bf16.msra.mxu1 %v2150_v28  ;;  %v951_v28 = vld [vmem:[#allocation3 + $0x260] sm:$0xff]  ;;  %2191 = vmatpush1.bf16.msra.mxu0 %v2190_v26  ;;  %v1021_v26 = vld [vmem:[#allocation3 + $0x490] sm:$0xff] }
  0x6e   : > { %2153 = vmatprep.subr.bf16.mxu1 %v2152_v29  ;;  %v945_v29 = vld [vmem:[#allocation3 + $0x230] sm:$0xff]  ;;  %v2192_v30 = vpack.c.bf16 %v951_v28, %v946_v27  ;;  %v1015_v27 = vld [vmem:[#allocation3 + $0x460] sm:$0xff]  ;;  %v2220_v28 = vpack.c.bf16 %v1021_v26, %v1016_v25  ;;  %v888_v25 = vld [vmem:[#allocation3 + $0x68] sm:$0xff] }
  0x6f   : > { %v2194_v32 = vpack.c.bf16 %v950_v31, %v945_v29  ;;  %v1020_v29 = vld [vmem:[#allocation3 + $0x488] sm:$0xff]  ;;  %v893_v26 = vld [vmem:[#allocation3 + $0x90] sm:$0xff] }
  0x70   : > { %2193 = vmatprep.subr.bf16.mxu0 %v2192_v30  ;;  %v2222_v30 = vpack.c.bf16 %v1020_v29, %v1015_v27 }
  0x71   : > { %2155 = vmatpush1.bf16.msra.mxu1 %v2154_v34  ;;  %v956_v34 = vld [vmem:[#allocation3 + $0x288] sm:$0xff]  ;;  %2195 = vmatpush1.bf16.msra.mxu0 %v2194_v32 }
  0x72   : > { %2157 = vmatprep.subr.bf16.mxu1 %v2156_v35  ;;  %v961_v35 = vld [vmem:[#allocation3 + $0x2b0] sm:$0xff] }
  0x73   : > { %v2196_v37 = vpack.c.bf16 %v961_v35, %v956_v34 }
  0x75   : > { %2159 = vmatpush1.bf16.msra.mxu1 %v2158_v40  ;;  %v2895_v40 = vshrl.u32 %v634_v33, 7  ;;  %2197 = vmatprep.subr.bf16.mxu0 %v2196_v37 }
  0x76   : > { %2161 = vmatprep.subr.bf16.mxu1 %v2160_v41  ;;  %v966_v41 = vld [vmem:[#allocation3 + $0x2d8] sm:$0xff]  ;;  %2199 = vmatpush1.bf16.msra.mxu0 %v2198_v39 }
  0x77   : > { %v2898_v47 = vsub.s32 0, %v2895_v40  ;;  %v2904_v52 = vsub.s32 1, %v2895_v40 }
  0x79   : > { %2163 = vmatpush1.bf16.msra.mxu1 %v2162_v44  ;;  %v2200_v44 = vpack.c.bf16 %v971_v42, %v966_v41  ;;  %v637_v57 = vrot.slane %v632_v51, %v2898_v47  ;;  %v641_v63 = vrot.slane %v632_v51, %v2904_v52 }
  0x7a   : > { %2229 = vmatprep.subr.bf16.mxu1 %v2228_v53  ;;  %v2204_v53 = vpack.c.bf16 %v981_v49, %v976_v48 }
  0x7b   : > { %2201 = vmatprep.subr.bf16.mxu0 %v2200_v44 }
  0x7c   : > { %2203 = vmatpush1.bf16.msra.mxu0 %v2202_v46 }
  0x7d   : > { %2205 = vmatprep.subr.bf16.mxu0 %v2204_v53 }
  0x80   : > { %2207 = vmatpush1.bf16.msra.mxu0 %v2206_v55 }
  0x81   : > { %2209 = vmatprep.subr.bf16.mxu0 %v2208_v0 }
  0x84   : > { %2211 = vmatpush1.bf16.msra.mxu0 %v2210_v5 }
  0x85   : > { %2213 = vmatprep.subr.bf16.mxu0 %v2212_v12  ;;  %v1934_v12 = vld [vmem:[%s3254_s6 + $0x2] ss:$4 sm:$0x3] }
  0x86   : > { %v722_v19 = vrot.slane %v1934_v12, %v2904_v52  ;;  %v718_v20 = vrot.slane %v1934_v12, %v2898_v47 }
  0x88   : > { %2215 = vmatpush1.bf16.msra.mxu0 %v2214_v16 }
  0x89   : > { %2217 = vmatprep.subr.bf16.mxu0 %v2216_v22  ;;  %v877_v22 = vld [vmem:[#allocation3 + $0x10] sm:$0xff] }
  0x8c   : > { %2219 = vmatpush1.bf16.msra.mxu0 %v2218_v24 }
  0x8d   : > { %2221 = vmatprep.subr.bf16.mxu0 %v2220_v28  ;;  %v2230_v28 = vpack.c.bf16 %v882_v23, %v877_v22  ;;  %v983_v22 = vld [vmem:[#allocation3 + $0x360] sm:$0xff] }
  0x90   : > { %2223 = vmatpush1.bf16.msra.mxu0 %v2222_v30  ;;  %v2232_v30 = vpack.c.bf16 %v893_v26, %v888_v25  ;;  %v977_v25 = vld [vmem:[#allocation3 + $0x330] sm:$0xff]  ;;  %v982_v26 = vld [vmem:[#allocation3 + $0x358] sm:$0xff] }
 0x10c   : > { %v627_v56 = vpop.f32.mrb[0].mxu0 }
 0x10d   : > { %v629_v62 = vpop.f32.mrb[1].mxu0 }
 0x10f   : > { %v545_v61 = vpop.f32.mrb[0].mxu1 }
 0x110   : > { %v628_v2 = vadd.f32 %v627_v56, %v545_v61  ;;  %v547_v3 = vpop.f32.mrb[1].mxu1 }
 0x111   : > { %v630_v4 = vadd.f32 %v629_v62, %v547_v3 }
 0x112   : > { %v644_v6 = vadd.f32 %v637_v57, %v628_v2 }
 0x113   : > { %v645_v11 = vadd.f32 %v641_v63, %v630_v4 }
 0x114   : > { %v646_v14 = vsub.f32 0.0, %v644_v6 }
 0x115   : > { %v647_v15 = vsub.f32 0.0, %v645_v11  ;;  %v1933_v11 = vld [vmem:[%s3254_s6 + $0x1] ss:$4 sm:$0x3] }
 0x116   : > { %v648_v17 = vmul.f32 1.442695, %v646_v14  ;;  %v705_v13 = vrot.slane %v1933_v11, %v2898_v47 }
 0x117   : > { %v650_v21 = vmul.f32 1.442695, %v647_v15  ;;  %v709_v15 = vrot.slane %v1933_v11, %v2904_v52 }
 0x118   : > { %2447 = vpow2.f32 %v648_v17 }
 0x119   : > { %2449 = vpow2.f32 %v650_v21 }
 0x122   : > { %v2448_v31 = vpop.eup %2447 }
 0x123   : > { %v2450_v32 = vpop.eup %2449  ;;  %v652_v33 = vadd.f32 1.0, %v2448_v31  ;;  %v887_v31 = vld [vmem:[#allocation3 + $0x60] sm:$0xff] }
 0x124   : > { %v653_v34 = vadd.f32 1.0, %v2450_v32  ;;  %v892_v32 = vld [vmem:[#allocation3 + $0x88] sm:$0xff] }
 0x125   : > { %2451 = vrcp.f32 %v652_v33  ;;  %v898_v33 = vld [vmem:[#allocation3 + $0xb8] sm:$0xff] }
 0x126   : > { %2453 = vrcp.f32 %v653_v34  ;;  %v903_v34 = vld [vmem:[#allocation3 + $0xe0] sm:$0xff] }
 0x12f   : > { %v2452_v35 = vpop.eup %2451 }
 0x130   : > { %v2454_v36 = vpop.eup %2453  ;;  %v662_v37 = vrot.slane %v2452_v35, 4 }
 0x131   : > { %v668_v38 = vrot.slane %v2454_v36, 4 }
 0x132   : > { %v663_v39 = vadd.f32 %v2452_v35, %v662_v37  ;;  %v897_v37 = vld [vmem:[#allocation3 + $0xb0] sm:$0xff] }
 0x133   : > { %v669_v41 = vadd.f32 %v2454_v36, %v668_v38  ;;  %v902_v38 = vld [vmem:[#allocation3 + $0xd8] sm:$0xff] }
 0x134   : > { %v664_v42 = vrot.slane %v663_v39, 2 }
 0x135   : > { %v670_v43 = vrot.slane %v669_v41, 2 }
 0x136   : > { %v665_v44 = vadd.f32 %v664_v42, %v663_v39  ;;  %v908_v39 = vld [vmem:[#allocation3 + $0x108] sm:$0xff]  ;;  %v2238_v42 = vpack.c.bf16 %v902_v38, %v897_v37  ;;  %v997_v37 = vld [vmem:[#allocation3 + $0x3d0] sm:$0xff]  ;;  %v1002_v38 = vld [vmem:[#allocation3 + $0x3f8] sm:$0xff] }
 0x137   : > { %v671_v45 = vadd.f32 %v670_v43, %v669_v41  ;;  %v913_v41 = vld [vmem:[#allocation3 + $0x130] sm:$0xff] }
 0x138   : > { %v666_v46 = vrot.slane %v665_v44, 1  ;;  %v2240_v43 = vpack.c.bf16 %v913_v41, %v908_v39  ;;  %v1008_v39 = vld [vmem:[#allocation3 + $0x428] sm:$0xff]  ;;  %v1013_v41 = vld [vmem:[#allocation3 + $0x450] sm:$0xff] }
 0x139   : > { %v672_v48 = vrot.slane %v671_v45, 1 }
 0x13a   : > { %v667_v49 = vadd.f32 %v666_v46, %v665_v44  ;;  %v907_v44 = vld [vmem:[#allocation3 + $0x100] sm:$0xff]  ;;  %v918_v46 = vld [vmem:[#allocation3 + $0x158] sm:$0xff] }
 0x13b   : > { %v673_v50 = vadd.f32 %v672_v48, %v671_v45  ;;  %v912_v45 = vld [vmem:[#allocation3 + $0x128] sm:$0xff]  ;;  %v923_v48 = vld [vmem:[#allocation3 + $0x180] sm:$0xff] }
 0x13c   : > { %v675_v51 = vmul.f32 0.125, %v667_v49  ;;  %v2242_v49 = vpack.c.bf16 %v912_v45, %v907_v44  ;;  %v1007_v44 = vld [vmem:[#allocation3 + $0x420] sm:$0xff]  ;;  %v1012_v45 = vld [vmem:[#allocation3 + $0x448] sm:$0xff] }
 0x13d   : > { %v676_v53 = vmul.f32 0.125, %v673_v50  ;;  %v2244_v50 = vpack.c.bf16 %v923_v48, %v918_v46  ;;  %v1018_v46 = vld [vmem:[#allocation3 + $0x478] sm:$0xff]  ;;  %v1023_v48 = vld [vmem:[#allocation3 + $0x4a0] sm:$0xff] }
 0x13e   : > { %v677_v54 = vsub.f32 %v2452_v35, %v675_v51  ;;  %v2234_v35 = vpack.c.bf16 %v892_v32, %v887_v31  ;;  %v917_v51 = vld [vmem:[#allocation3 + $0x150] sm:$0xff]  ;;  %v987_v31 = vld [vmem:[#allocation3 + $0x380] sm:$0xff]  ;;  %v992_v32 = vld [vmem:[#allocation3 + $0x3a8] sm:$0xff] }
 0x13f   : > { %v678_v55 = vsub.f32 %v2454_v36, %v676_v53  ;;  %v2236_v36 = vpack.c.bf16 %v903_v34, %v898_v33  ;;  %v922_v53 = vld [vmem:[#allocation3 + $0x178] sm:$0xff]  ;;  %v1003_v34 = vld [vmem:[#allocation3 + $0x400] sm:$0xff] }
 0x140   : > { %v679_v56 = vmul.f32 %v677_v54, %v677_v54  ;;  %v998_v33 = vld [vmem:[#allocation3 + $0x3d8] sm:$0xff] }
 0x141   : > { %v680_v57 = vmul.f32 %v678_v55, %v678_v55 }
 0x142   : > { %v681_v58 = vrot.slane %v679_v56, 4 }
 0x143   : > { %v687_v59 = vrot.slane %v680_v57, 4 }
 0x144   : > { %v682_v60 = vadd.f32 %v681_v58, %v679_v56  ;;  %v2246_v56 = vpack.c.bf16 %v922_v53, %v917_v51  ;;  %v927_v58 = vld [vmem:[#allocation3 + $0x1a0] sm:$0xff]  ;;  %v1017_v51 = vld [vmem:[#allocation3 + $0x470] sm:$0xff]  ;;  %v1022_v53 = vld [vmem:[#allocation3 + $0x498] sm:$0xff] }
 0x145   : > { %v688_v61 = vadd.f32 %v687_v59, %v680_v57  ;;  %v932_v59 = vld [vmem:[#allocation3 + $0x1c8] sm:$0xff] }
 0x146   : > { %v683_v62 = vrot.slane %v682_v60, 2 }
 0x147   : > { %v689_v63 = vrot.slane %v688_v61, 2 }
 0x148   : > { %v684_v0 = vadd.f32 %v683_v62, %v682_v60  ;;  %v938_v60 = vld [vmem:[#allocation3 + $0x1f8] sm:$0xff]  ;;  %v2250_v62 = vpack.c.bf16 %v932_v59, %v927_v58  ;;  %v1025_v58 = vld [vmem:[#allocation3 + $0x4b0] sm:$0xff] }
 0x149   : > { %v690_v1 = vadd.f32 %v689_v63, %v688_v61  ;;  %v943_v61 = vld [vmem:[#allocation3 + $0x220] sm:$0xff]  ;;  %v1030_v59 = vld [vmem:[#allocation3 + $0x4d8] sm:$0xff] }
 0x14a   : > { %v685_v2 = vrot.slane %v684_v0, 1  ;;  %v2252_v63 = vpack.c.bf16 %v943_v61, %v938_v60  ;;  %v1028_v60 = vld [vmem:[#allocation3 + $0x4c8] sm:$0xff]  ;;  %v2226_v61 = vpack.c.bf16 %v1030_v59, %v1025_v58  ;;  %v949_v59 = vld [vmem:[#allocation3 + $0x250] sm:$0xff] }
 0x14b   : > { %v691_v3 = vrot.slane %v690_v1, 1 }
 0x14c   : > { %v686_v4 = vadd.f32 %v685_v2, %v684_v0  ;;  %v937_v0 = vld [vmem:[#allocation3 + $0x1f0] sm:$0xff]  ;;  %v948_v2 = vld [vmem:[#allocation3 + $0x248] sm:$0xff] }
 0x14d   : > { %v692_v5 = vadd.f32 %v691_v3, %v690_v1  ;;  %v942_v1 = vld [vmem:[#allocation3 + $0x218] sm:$0xff]  ;;  %v953_v3 = vld [vmem:[#allocation3 + $0x270] sm:$0xff] }
 0x14e   : > { %v693_v6 = vmul.f32 0.125, %v686_v4  ;;  %v2254_v4 = vpack.c.bf16 %v942_v1, %v937_v0  ;;  %v1032_v0 = vld [vmem:[#allocation3 + $0x4e8] sm:$0xff] }
 0x14f   : > { %v694_v8 = vmul.f32 0.125, %v692_v5  ;;  %v2256_v5 = vpack.c.bf16 %v953_v3, %v948_v2  ;;  %v959_v3 = vld [vmem:[#allocation3 + $0x2a0] sm:$0xff] }
 0x150   : > { %v695_v9 = vadd.f32 1e-05, %v693_v6  ;;  %v947_v6 = vld [vmem:[#allocation3 + $0x240] sm:$0xff] }
 0x151   : > { %v696_v10 = vadd.f32 1e-05, %v694_v8  ;;  %v952_v8 = vld [vmem:[#allocation3 + $0x268] sm:$0xff] }
 0x152   : > { %2455 = vrsqrt.f32 %v695_v9  ;;  %v958_v9 = vld [vmem:[#allocation3 + $0x298] sm:$0xff]  ;;  %v2258_v11 = vpack.c.bf16 %v952_v8, %v947_v6 }
 0x153   : > { %2457 = vrsqrt.f32 %v696_v10  ;;  %v963_v10 = vld [vmem:[#allocation3 + $0x2c0] sm:$0xff]  ;;  %v1935_v6 = vld [vmem:[%s3254_s6 + $0x3] ss:$4 sm:$0x3] }
 0x154   : > { %v2260_v12 = vpack.c.bf16 %v963_v10, %v958_v9  ;;  %v801_v8 = vrot.slane %v1935_v6, %v2904_v52  ;;  %v797_v9 = vrot.slane %v1935_v6, %v2898_v47  ;;  %v879_v10 = vld [vmem:[#allocation3 + $0x20] sm:$0xff] }
 0x15c   : > { %v2456_v14 = vpop.eup %2455 }
 0x15d   : > { %v2458_v16 = vpop.eup %2457  ;;  %v699_v17 = vmul.f32 %v2456_v14, %v677_v54  ;;  %v928_v54 = vld [vmem:[#allocation3 + $0x1a8] sm:$0xff]  ;;  %v962_v14 = vld [vmem:[#allocation3 + $0x2b8] sm:$0xff] }
 0x15e   : > { %v700_v18 = vmul.f32 %v2458_v16, %v678_v55  ;;  %v933_v55 = vld [vmem:[#allocation3 + $0x1d0] sm:$0xff] }
 0x15f   : > { %v712_v21 = vmul.f32 %v705_v13, %v699_v17  ;;  %v2248_v57 = vpack.c.bf16 %v933_v55, %v928_v54  ;;  %v957_v13 = vld [vmem:[#allocation3 + $0x290] sm:$0xff]  ;;  %v2286_v54 = vpack.c.bf16 %v1022_v53, %v1017_v51  ;;  %v1026_v55 = vld [vmem:[#allocation3 + $0x4b8] sm:$0xff]  ;;  %v939_v53 = vld [vmem:[#allocation3 + $0x200] sm:$0xff] }
 0x160   : > { %v713_v24 = vmul.f32 %v709_v15, %v700_v18  ;;  %v968_v15 = vld [vmem:[#allocation3 + $0x2e8] sm:$0xff]  ;;  %v973_v16 = vld [vmem:[#allocation3 + $0x310] sm:$0xff]  ;;  %v2262_v17 = vpack.c.bf16 %v962_v14, %v957_v13  ;;  %v974_v14 = vld [vmem:[#allocation3 + $0x318] sm:$0xff] }
 0x161   : > { %v725_v29 = vadd.f32 %v718_v20, %v712_v21  ;;  %v2264_v18 = vpack.c.bf16 %v973_v16, %v968_v15  ;;  %v972_v20 = vld [vmem:[#allocation3 + $0x308] sm:$0xff]  ;;  %v978_v21 = vld [vmem:[#allocation3 + $0x338] sm:$0xff]  ;;  %v969_v13 = vld [vmem:[#allocation3 + $0x2f0] sm:$0xff] }
 0x162   : > { %v726_v27 = vadd.f32 %v722_v19, %v713_v24  ;;  %v967_v19 = vld [vmem:[#allocation3 + $0x2e0] sm:$0xff]  ;;  %v2268_v24 = vpack.c.bf16 %v983_v22, %v978_v21  ;;  %v894_v21 = vld [vmem:[#allocation3 + $0x98] sm:$0xff] }
 0x163   : > { %v2266_v23 = vpack.c.bf16 %v972_v20, %v967_v19  ;;  %v2296_v19 = vpack.c.bf16 %v974_v14, %v969_v13  ;;  %v889_v20 = vld [vmem:[#allocation3 + $0x70] sm:$0xff]  ;;  %v979_v22 = vld [vmem:[#allocation3 + $0x340] sm:$0xff]  ;;  %v1515_v13 = vld [vmem:[%s3258_s10 + $0x190] sm:$0xff] }
 0x164   : > { %868 = vmatprep.mubr.f32.mxu1 %v726_v27  ;;  %v988_v27 = vld [vmem:[#allocation3 + $0x388] sm:$0xff] }
 0x165   : > { %869 = vmatmul.mubr.f32.vlgmr.msra.gmra.mrb[2].mxu1 %v725_v29  ;;  %v2270_v29 = vpack.c.bf16 %v982_v26, %v977_v25  ;;  %v899_v26 = vld [vmem:[#allocation3 + $0xc0] sm:$0xff] }
 0x166   : > { %2231 = vmatpush1.bf16.msra.mxu1 %v2230_v28  ;;  %v993_v28 = vld [vmem:[#allocation3 + $0x3b0] sm:$0xff] }
 0x167   : > { %2233 = vmatprep.subr.bf16.mxu1 %v2232_v30  ;;  %v2272_v30 = vpack.c.bf16 %v993_v28, %v988_v27  ;;  %v904_v27 = vld [vmem:[#allocation3 + $0xe8] sm:$0xff]  ;;  %v989_v28 = vld [vmem:[#allocation3 + $0x390] sm:$0xff] }
 0x16a   : > { %2235 = vmatpush1.bf16.msra.mxu1 %v2234_v35  ;;  %v2274_v35 = vpack.c.bf16 %v992_v32, %v987_v31  ;;  %v909_v32 = vld [vmem:[#allocation3 + $0x110] sm:$0xff] }
 0x16b   : > { %2237 = vmatprep.subr.bf16.mxu1 %v2236_v36  ;;  %v2276_v36 = vpack.c.bf16 %v1003_v34, %v998_v33  ;;  %v914_v33 = vld [vmem:[#allocation3 + $0x138] sm:$0xff]  ;;  %v999_v34 = vld [vmem:[#allocation3 + $0x3e0] sm:$0xff] }
 0x16e   : > { %2239 = vmatpush1.bf16.msra.mxu1 %v2238_v42  ;;  %v2278_v42 = vpack.c.bf16 %v1002_v38, %v997_v37  ;;  %v919_v38 = vld [vmem:[#allocation3 + $0x160] sm:$0xff] }
 0x16f   : > { %2241 = vmatprep.subr.bf16.mxu1 %v2240_v43  ;;  %v2280_v43 = vpack.c.bf16 %v1013_v41, %v1008_v39  ;;  %v924_v39 = vld [vmem:[#allocation3 + $0x188] sm:$0xff]  ;;  %v1009_v41 = vld [vmem:[#allocation3 + $0x430] sm:$0xff] }
 0x172   : > { %2243 = vmatpush1.bf16.msra.mxu1 %v2242_v49  ;;  %v2282_v49 = vpack.c.bf16 %v1012_v45, %v1007_v44  ;;  %v929_v45 = vld [vmem:[#allocation3 + $0x1b0] sm:$0xff] }
 0x173   : > { %2245 = vmatprep.subr.bf16.mxu1 %v2244_v50  ;;  %v2284_v50 = vpack.c.bf16 %v1023_v48, %v1018_v46  ;;  %v934_v46 = vld [vmem:[#allocation3 + $0x1d8] sm:$0xff]  ;;  %v1019_v48 = vld [vmem:[#allocation3 + $0x480] sm:$0xff] }
 0x176   : > { %2247 = vmatpush1.bf16.msra.mxu1 %v2246_v56  ;;  %v1031_v56 = vld [vmem:[#allocation3 + $0x4e0] sm:$0xff] }
 0x177   : > { %2249 = vmatprep.subr.bf16.mxu1 %v2248_v57  ;;  %v2224_v57 = vpack.c.bf16 %v1031_v56, %v1026_v55  ;;  %v1029_v55 = vld [vmem:[#allocation3 + $0x4d0] sm:$0xff]  ;;  %v1034_v56 = vld [vmem:[#allocation3 + $0x4f8] sm:$0xff] }
 0x178   : > { %v2320_v58 = vpack.c.bf16 %v1034_v56, %v1029_v55  ;;  %v1473_v55 = vld [vmem:[%s3258_s10 + $0x40] sm:$0xff]  ;;  %v1474_v56 = vld [vmem:[%s3258_s10 + $0x48] sm:$0xff] }
 0x179   : > { %2225 = vmatprep.subr.bf16.mxu0 %v2224_v57 }
 0x17a   : > { %2251 = vmatpush1.bf16.msra.mxu1 %v2250_v62  ;;  %v1033_v62 = vld [vmem:[#allocation3 + $0x4f0] sm:$0xff]  ;;  %2227 = vmatpush1.bf16.msra.mxu0 %v2226_v61 }
 0x17b   : > { %2253 = vmatprep.subr.bf16.mxu1 %v2252_v63  ;;  %v1027_v63 = vld [vmem:[#allocation3 + $0x4c0] sm:$0xff]  ;;  %v2288_v1 = vpack.c.bf16 %v1033_v62, %v1028_v60  ;;  %v954_v60 = vld [vmem:[#allocation3 + $0x278] sm:$0xff] }
 0x17c   : > { %v2290_v2 = vpack.c.bf16 %v1032_v0, %v1027_v63  ;;  %v2322_v61 = vpack.c.bf16 %v954_v60, %v949_v59  ;;  %v1481_v62 = vld [vmem:[%s3258_s10 + $0x80] sm:$0xff]  ;;  %v1482_v63 = vld [vmem:[%s3258_s10 + $0x88] sm:$0xff]  ;;  %v1491_v60 = vld [vmem:[%s3258_s10 + $0xd0] sm:$0xff] }
 0x17d   : > { %v1513_v0 = vld [vmem:[%s3258_s10 + $0x180] sm:$0xff]  ;;  %v1506_v59 = vld [vmem:[%s3258_s10 + $0x148] sm:$0xff] }
 0x17e   : > { %2255 = vmatpush1.bf16.msra.mxu1 %v2254_v4  ;;  %v964_v4 = vld [vmem:[#allocation3 + $0x2c8] sm:$0xff] }
 0x17f   : > { %2257 = vmatprep.subr.bf16.mxu1 %v2256_v5  ;;  %v2292_v5 = vpack.c.bf16 %v964_v4, %v959_v3  ;;  %v1465_v3 = vld [vmem:[%s3258_s10] sm:$0xff]  ;;  %v1466_v4 = vld [vmem:[%s3258_s10 + $0x8] sm:$0xff] }
 0x180   : > { %v2326_v6 = vpack.c.bf16 %v1466_v4, %v1465_v3  ;;  %v1475_v3 = vld [vmem:[%s3258_s10 + $0x50] sm:$0xff]  ;;  %v1476_v4 = vld [vmem:[%s3258_s10 + $0x58] sm:$0xff] }
 0x181   : > { %2293 = vmatprep.subr.bf16.mxu0 %v2292_v5 }
 0x182   : > { %2259 = vmatpush1.bf16.msra.mxu1 %v2258_v11  ;;  %v884_v11 = vld [vmem:[#allocation3 + $0x48] sm:$0xff] }
 0x183   : > { %2261 = vmatprep.subr.bf16.mxu1 %v2260_v12 }
 0x186   : > { %2263 = vmatpush1.bf16.msra.mxu1 %v2262_v17  ;;  %v2294_v17 = vpack.c.bf16 %v884_v11, %v879_v10  ;;  %v1483_v11 = vld [vmem:[%s3258_s10 + $0x90] sm:$0xff] }
 0x187   : > { %2265 = vmatprep.subr.bf16.mxu1 %v2264_v18 }
 0x18a   : > { %2267 = vmatpush1.bf16.msra.mxu1 %v2266_v23  ;;  %v984_v23 = vld [vmem:[#allocation3 + $0x368] sm:$0xff] }
 0x18b   : > { %2269 = vmatprep.subr.bf16.mxu1 %v2268_v24  ;;  %v2298_v24 = vpack.c.bf16 %v894_v21, %v889_v20  ;;  %v2300_v25 = vpack.c.bf16 %v984_v23, %v979_v22  ;;  %v1499_v20 = vld [vmem:[%s3258_s10 + $0x110] sm:$0xff]  ;;  %v1500_v21 = vld [vmem:[%s3258_s10 + $0x118] sm:$0xff]  ;;  %v1485_v22 = vld [vmem:[%s3258_s10 + $0xa0] sm:$0xff] }
 0x18c   : > { %v2362_v23 = vpack.c.bf16 %v1500_v21, %v1499_v20  ;;  %v1510_v20 = vld [vmem:[%s3258_s10 + $0x168] sm:$0xff]  ;;  %v1495_v21 = vld [vmem:[%s3258_s10 + $0xf0] sm:$0xff] }
 0x18e   : > { %2271 = vmatpush1.bf16.msra.mxu1 %v2270_v29  ;;  %v994_v29 = vld [vmem:[#allocation3 + $0x3b8] sm:$0xff] }
 0x18f   : > { %2273 = vmatprep.subr.bf16.mxu1 %v2272_v30  ;;  %v2302_v30 = vpack.c.bf16 %v904_v27, %v899_v26  ;;  %v2304_v31 = vpack.c.bf16 %v994_v29, %v989_v28  ;;  %v1518_v26 = vld [vmem:[%s3258_s10 + $0x1a8] sm:$0xff]  ;;  %v1469_v29 = vld [vmem:[%s3258_s10 + $0x20] sm:$0xff] }
 0x192   : > { %2275 = vmatpush1.bf16.msra.mxu1 %v2274_v35  ;;  %v1004_v35 = vld [vmem:[#allocation3 + $0x408] sm:$0xff] }
 0x193   : > { %2277 = vmatprep.subr.bf16.mxu1 %v2276_v36  ;;  %v2306_v36 = vpack.c.bf16 %v914_v33, %v909_v32  ;;  %v2308_v37 = vpack.c.bf16 %v1004_v35, %v999_v34  ;;  %v1502_v33 = vld [vmem:[%s3258_s10 + $0x128] sm:$0xff]  ;;  %v1487_v34 = vld [vmem:[%s3258_s10 + $0xb0] sm:$0xff]  ;;  %v1488_v35 = vld [vmem:[%s3258_s10 + $0xb8] sm:$0xff] }
 0x196   : > { %2279 = vmatpush1.bf16.msra.mxu1 %v2278_v42  ;;  %v1014_v42 = vld [vmem:[#allocation3 + $0x458] sm:$0xff] }
 0x197   : > { %2281 = vmatprep.subr.bf16.mxu1 %v2280_v43  ;;  %v2310_v43 = vpack.c.bf16 %v924_v39, %v919_v38  ;;  %v2312_v44 = vpack.c.bf16 %v1014_v42, %v1009_v41  ;;  %v1519_v38 = vld [vmem:[%s3258_s10 + $0x1b0] sm:$0xff]  ;;  %v1520_v39 = vld [vmem:[%s3258_s10 + $0x1b8] sm:$0xff] }
 0x198   : > { %v1471_v41 = vld [vmem:[%s3258_s10 + $0x30] sm:$0xff]  ;;  %v2368_v42 = vpack.c.bf16 %v1520_v39, %v1519_v38  ;;  %v3123_v38 = vsub.s32 3, %v2895_v40 }
 0x19a   : > { %2283 = vmatpush1.bf16.msra.mxu1 %v2282_v49  ;;  %v1024_v49 = vld [vmem:[#allocation3 + $0x4a8] sm:$0xff] }
 0x19b   : > { %2285 = vmatprep.subr.bf16.mxu1 %v2284_v50  ;;  %v2314_v50 = vpack.c.bf16 %v934_v46, %v929_v45  ;;  %v2316_v51 = vpack.c.bf16 %v1024_v49, %v1019_v48  ;;  %v1504_v45 = vld [vmem:[%s3258_s10 + $0x138] sm:$0xff]  ;;  %v1489_v48 = vld [vmem:[%s3258_s10 + $0xc0] sm:$0xff]  ;;  %v1490_v49 = vld [vmem:[%s3258_s10 + $0xc8] sm:$0xff] }
 0x19e   : > { %2287 = vmatpush1.bf16.msra.mxu1 %v2286_v54  ;;  %v944_v54 = vld [vmem:[#allocation3 + $0x228] sm:$0xff] }
 0x19f   : > { %2289 = vmatprep.subr.bf16.mxu1 %v2288_v1  ;;  %v2318_v57 = vpack.c.bf16 %v944_v54, %v939_v53  ;;  %v2324_v1 = vpack.c.bf16 %v1482_v63, %v1481_v62  ;;  %v2340_v53 = vpack.c.bf16 %v1490_v49, %v1489_v48  ;;  %v1522_v54 = vld [vmem:[%s3258_s10 + $0x1c8] sm:$0xff]  ;;  %v1523_v62 = vld [vmem:[%s3258_s10 + $0x1d0] sm:$0xff]  ;;  %v1524_v63 = vld [vmem:[%s3258_s10 + $0x1d8] sm:$0xff] }
 0x1a2   : > { %2291 = vmatpush1.bf16.msra.mxu1 %v2290_v2  ;;  %v1514_v2 = vld [vmem:[%s3258_s10 + $0x188] sm:$0xff] }
 0x1a3   : > { %v2356_v5 = vpack.c.bf16 %v1514_v2, %v1513_v0  ;;  %v2342_v0 = vpack.c.bf16 %v1474_v56, %v1473_v55 }
 0x1a5   : > { %2357 = vmatprep.subr.bf16.mxu1 %v2356_v5  ;;  %v1507_v5 = vld [vmem:[%s3258_s10 + $0x150] sm:$0xff] }
 0x238   : > { %v870_v12 = vpop.f32.mrb[2].mxu1 }
 0x239   : > { %v872_v15 = vpop.f32.mrb[3].mxu1  ;;  %v871_v18 = vadd.f32 %v870_v12, %v797_v9  ;;  %v1498_v9 = vld [vmem:[%s3258_s10 + $0x108] sm:$0xff]  ;;  %v1484_v12 = vld [vmem:[%s3258_s10 + $0x98] sm:$0xff] }
 0x23a   : > { %v873_v16 = vadd.f32 %v872_v15, %v801_v8  ;;  %v1497_v8 = vld [vmem:[%s3258_s10 + $0x100] sm:$0xff]  ;;  %v2328_v14 = vpack.c.bf16 %v1484_v12, %v1483_v11  ;;  %v1516_v15 = vld [vmem:[%s3258_s10 + $0x198] sm:$0xff]  ;;  %v1526_v12 = vld [vmem:[%s3258_s10 + $0x1e8] sm:$0xff] }
 0x23b   : > { %v2358_v10 = vpack.c.bf16 %v1498_v9, %v1497_v8  ;;  %v1508_v8 = vld [vmem:[%s3258_s10 + $0x158] sm:$0xff]  ;;  %v1493_v9 = vld [vmem:[%s3258_s10 + $0xe0] sm:$0xff] }
 0x23c   : > { %1126 = vmatprep.mubr.f32.mxu0 %v873_v16  ;;  %1197 = vmatprep.mubr.f32.mxu1 %v873_v16  ;;  %v1525_v11 = vld [vmem:[%s3258_s10 + $0x1e0] sm:$0xff] }
 0x23d   : > { %1127 = vmatmul.mubr.f32.vlgmr.msra.gmra.mrb[2].mxu0 %v871_v18  ;;  %1198 = vmatmul.mubr.f32.vlgmr.msra.gmra.mrb[4].mxu1 %v871_v18 }
 0x23e   : > { %2295 = vmatpush3.bf16.msra.mxu0 %v2294_v17  ;;  %1268 = vmatprep.mubr.f32.mxu0 %v873_v16  ;;  %v1467_v16 = vld [vmem:[%s3258_s10 + $0x10] sm:$0xff]  ;;  %v1468_v17 = vld [vmem:[%s3258_s10 + $0x18] sm:$0xff] }
 0x23f   : > { %2297 = vmatprep.subr.bf16.mxu0 %v2296_v19  ;;  %2359 = vmatpush3.bf16.msra.mxu1 %v2358_v10  ;;  %v2330_v19 = vpack.c.bf16 %v1468_v17, %v1467_v16  ;;  %v1494_v10 = vld [vmem:[%s3258_s10 + $0xe8] sm:$0xff]  ;;  %v1477_v16 = vld [vmem:[%s3258_s10 + $0x60] sm:$0xff] }
 0x240   : > { %v1478_v17 = vld [vmem:[%s3258_s10 + $0x68] sm:$0xff] }
 0x242   : > { %2299 = vmatpush3.bf16.msra.mxu0 %v2298_v24  ;;  %v1486_v24 = vld [vmem:[%s3258_s10 + $0xa8] sm:$0xff] }
 0x243   : > { %2301 = vmatprep.subr.bf16.mxu0 %v2300_v25  ;;  %v1517_v25 = vld [vmem:[%s3258_s10 + $0x1a0] sm:$0xff]  ;;  %v2332_v27 = vpack.c.bf16 %v1486_v24, %v1485_v22  ;;  %v1496_v22 = vld [vmem:[%s3258_s10 + $0xf8] sm:$0xff] }
 0x244   : > { %v2364_v28 = vpack.c.bf16 %v1518_v26, %v1517_v25  ;;  %v1528_v24 = vld [vmem:[%s3258_s10 + $0x1f8] sm:$0xff]  ;;  %v2350_v25 = vpack.c.bf16 %v1478_v17, %v1477_v16 }
 0x246   : > { %2303 = vmatpush3.bf16.msra.mxu0 %v2302_v30  ;;  %v1470_v30 = vld [vmem:[%s3258_s10 + $0x28] sm:$0xff] }
 0x247   : > { %2305 = vmatprep.subr.bf16.mxu0 %v2304_v31  ;;  %v1501_v31 = vld [vmem:[%s3258_s10 + $0x120] sm:$0xff]  ;;  %v2334_v32 = vpack.c.bf16 %v1470_v30, %v1469_v29  ;;  %v1480_v29 = vld [vmem:[%s3258_s10 + $0x78] sm:$0xff] }
 0x24a   : > { %2307 = vmatpush3.bf16.msra.mxu0 %v2306_v36  ;;  %v2366_v36 = vpack.c.bf16 %v1502_v33, %v1501_v31  ;;  %v1511_v31 = vld [vmem:[%s3258_s10 + $0x170] sm:$0xff] }
 0x24b   : > { %2309 = vmatprep.subr.bf16.mxu0 %v2308_v37  ;;  %v2336_v37 = vpack.c.bf16 %v1488_v35, %v1487_v34  ;;  %v2543_v35 = vmov 0.0|0.0  }
 0x24e   : > { %2311 = vmatpush3.bf16.msra.mxu0 %v2310_v43  ;;  %v1472_v43 = vld [vmem:[%s3258_s10 + $0x38] sm:$0xff] }
 0x24f   : > { %2313 = vmatprep.subr.bf16.mxu0 %v2312_v44  ;;  %v1503_v44 = vld [vmem:[%s3258_s10 + $0x130] sm:$0xff]  ;;  %v2338_v46 = vpack.c.bf16 %v1472_v43, %v1471_v41 }
 0x252   : > { %2315 = vmatpush3.bf16.msra.mxu0 %v2314_v50  ;;  %v1521_v50 = vld [vmem:[%s3258_s10 + $0x1c0] sm:$0xff] }
 0x253   : > { %2317 = vmatprep.subr.bf16.mxu0 %v2316_v51  ;;  %v2370_v51 = vpack.c.bf16 %v1504_v45, %v1503_v44 }
 0x256   : > { %2319 = vmatpush3.bf16.msra.mxu0 %v2318_v57  ;;  %v2372_v57 = vpack.c.bf16 %v1522_v54, %v1521_v50 }
 0x257   : > { %2321 = vmatprep.subr.bf16.mxu0 %v2320_v58  ;;  %v1505_v58 = vld [vmem:[%s3258_s10 + $0x140] sm:$0xff] }
 0x25a   : > { %2323 = vmatpush3.bf16.msra.mxu0 %v2322_v61  ;;  %v1492_v61 = vld [vmem:[%s3258_s10 + $0xd8] sm:$0xff] }
 0x25b   : > { %2325 = vmatprep.subr.bf16.mxu0 %v2324_v1  ;;  %v2374_v1 = vpack.c.bf16 %v1506_v59, %v1505_v58  ;;  %v2344_v2 = vpack.c.bf16 %v1492_v61, %v1491_v60 }
 0x25d   : > { %1269 = vmatmul.mubr.f32.vlgmr.msra.gmra.mrb[4].mxu0 %v871_v18  ;;  %v2360_v18 = vpack.c.bf16 %v1516_v15, %v1515_v13  ;;  %v2346_v13 = vpack.c.bf16 %v1476_v4, %v1475_v3  ;;  %v2348_v15 = vpack.c.bf16 %v1494_v10, %v1493_v9 }
 0x25e   : > { %2327 = vmatpush3.bf16.msra.mxu0 %v2326_v6  ;;  %v2376_v6 = vpack.c.bf16 %v1524_v63, %v1523_v62 }
 0x25f   : > { %2329 = vmatprep.subr.bf16.mxu0 %v2328_v14  ;;  %2361 = vmatprep.subr.bf16.mxu1 %v2360_v18  ;;  %v2378_v14 = vpack.c.bf16 %v1508_v8, %v1507_v5  ;;  %v1509_v18 = vld [vmem:[%s3258_s10 + $0x160] sm:$0xff] }
 0x260   : > { %2363 = vmatpush3.bf16.msra.mxu1 %v2362_v23  ;;  %v1527_v23 = vld [vmem:[%s3258_s10 + $0x1f0] sm:$0xff]  ;;  %v2382_v26 = vpack.c.bf16 %v1510_v20, %v1509_v18 }
 0x261   : > { %2365 = vmatprep.subr.bf16.mxu1 %v2364_v28  ;;  %v1479_v28 = vld [vmem:[%s3258_s10 + $0x70] sm:$0xff]  ;;  %v2384_v30 = vpack.c.bf16 %v1528_v24, %v1527_v23 }
 0x262   : > { %2331 = vmatpush3.bf16.msra.mxu0 %v2330_v19  ;;  %v2380_v19 = vpack.c.bf16 %v1526_v12, %v1525_v11  ;;  %v2354_v33 = vpack.c.bf16 %v1480_v29, %v1479_v28 }
 0x263   : > { %2333 = vmatprep.subr.bf16.mxu0 %v2332_v27  ;;  %v2352_v27 = vpack.c.bf16 %v1496_v22, %v1495_v21 }
 0x264   : > { %2367 = vmatpush3.bf16.msra.mxu1 %v2366_v36  ;;  %v3117_v36 = vsub.s32 2, %v2895_v40 }
 0x265   : > { %2369 = vmatprep.subr.bf16.mxu1 %v2368_v42 }
 0x266   : > { %2335 = vmatpush3.bf16.msra.mxu0 %v2334_v32  ;;  %v1512_v32 = vld [vmem:[%s3258_s10 + $0x178] sm:$0xff] }
 0x267   : > { %2337 = vmatprep.subr.bf16.mxu0 %v2336_v37  ;;  %v2386_v34 = vpack.c.bf16 %v1512_v32, %v1511_v31  ;;  %v1035_v37 = vld [vmem:[%s3257_s9] ss:$4 sm:$0x1f] }
 0x268   : > { %2371 = vmatpush3.bf16.msra.mxu1 %v2370_v51  ;;  %v1040_v39 = vrot.slane %v1035_v37, %v2898_v47  ;;  %v1048_v41 = vrot.slane %v1035_v37, %v3117_v36  ;;  %v1044_v42 = vrot.slane %v1035_v37, %v2904_v52  ;;  %v1052_v43 = vrot.slane %v1035_v37, %v3123_v38 }
 0x269   : > { %2373 = vmatprep.subr.bf16.mxu1 %v2372_v57 }
 0x26a   : > { %2339 = vmatpush3.bf16.msra.mxu0 %v2338_v46 }
 0x26b   : > { %2341 = vmatprep.subr.bf16.mxu0 %v2340_v53 }
 0x26c   : > { %2375 = vmatpush3.bf16.msra.mxu1 %v2374_v1 }
 0x26d   : > { %2377 = vmatprep.subr.bf16.mxu1 %v2376_v6  ;;  %v3130_v6 = vsub.s32 4, %v2895_v40 }
 0x26e   : > { %2343 = vmatpush3.bf16.msra.mxu0 %v2342_v0 }
 0x26f   : > { %2345 = vmatprep.subr.bf16.mxu0 %v2344_v2 }
 0x270   : > { %2379 = vmatpush3.bf16.msra.mxu1 %v2378_v14 }
 0x271   : > { %2381 = vmatprep.subr.bf16.mxu1 %v2380_v19 }
 0x272   : > { %2347 = vmatpush3.bf16.msra.mxu0 %v2346_v13  ;;  %v1056_v13 = vrot.slane %v1035_v37, %v3130_v6 }
 0x273   : > { %2349 = vmatprep.subr.bf16.mxu0 %v2348_v15 }
 0x274   : > { %2383 = vmatpush3.bf16.msra.mxu1 %v2382_v26 }
 0x275   : > { %2385 = vmatprep.subr.bf16.mxu1 %v2384_v30 }
 0x276   : > { %2351 = vmatpush3.bf16.msra.mxu0 %v2350_v25 }
 0x277   : > { %2353 = vmatprep.subr.bf16.mxu0 %v2352_v27 }
 0x278   : > { %2387 = vmatpush3.bf16.msra.mxu1 %v2386_v34 }
 0x27a   : > { %2355 = vmatpush3.bf16.msra.mxu0 %v2354_v33 }
 0x27b   : > { %2388 = vmatprep.subr.bf16.mxu0 %v2543_v35 }
 0x310   : > { %v1128_v44 = vpop.f32.mrb[2].mxu0  ;;  %v1199_v45 = vpop.f32.mrb[4].mxu1 }
 0x311   : > { %v1129_v46 = vadd.f32 %v1128_v44, %v1040_v39  ;;  %v1200_v48 = vadd.f32 %v1199_v45, %v1048_v41  ;;  %v1130_v49 = vpop.f32.mrb[3].mxu0  ;;  %v1201_v50 = vpop.f32.mrb[5].mxu1 }
 0x312   : > { %v1131_v51 = vadd.f32 %v1130_v49, %v1044_v42  ;;  %v1202_v53 = vadd.f32 %v1201_v50, %v1052_v43 }
 0x313   : > { %v1274_v54 = vsub.f32 0.0, %v1129_v46  ;;  %v1276_v55 = vsub.f32 0.0, %v1200_v48 }
 0x314   : > { %v1275_v56 = vsub.f32 0.0, %v1131_v51  ;;  %v1277_v57 = vsub.f32 0.0, %v1202_v53 }
 0x315   : > { %v1279_v58 = vmul.f32 1.442695, %v1274_v54  ;;  %v1283_v59 = vmul.f32 1.442695, %v1276_v55 }
 0x316   : > { %v1281_v60 = vmul.f32 1.442695, %v1275_v56  ;;  %v1285_v61 = vmul.f32 1.442695, %v1277_v57 }
 0x317   : > { %2459 = vpow2.f32 %v1279_v58 }
 0x318   : > { %2461 = vpow2.f32 %v1283_v59 }
 0x319   : > { %2463 = vpow2.f32 %v1281_v60 }
 0x31a   : > { %2465 = vpow2.f32 %v1285_v61 }
 0x321   : > { %v2460_v62 = vpop.eup %2459 }
 0x322   : > { %v2462_v63 = vpop.eup %2461  ;;  %v1289_v0 = vadd.f32 1.0, %v2460_v62 }
 0x323   : > { %v2464_v1 = vpop.eup %2463  ;;  %v1291_v2 = vadd.f32 1.0, %v2462_v63 }
 0x324   : > { %v2466_v3 = vpop.eup %2465  ;;  %2467 = vrcp.f32 %v1289_v0  ;;  %v1290_v4 = vadd.f32 1.0, %v2464_v1 }
 0x325   : > { %2469 = vrcp.f32 %v1291_v2  ;;  %v1292_v5 = vadd.f32 1.0, %v2466_v3 }
 0x326   : > { %2471 = vrcp.f32 %v1290_v4 }
 0x327   : > { %2473 = vrcp.f32 %v1292_v5 }
 0x32e   : > { %v2468_v8 = vpop.eup %2467 }
 0x32f   : > { %v2470_v9 = vpop.eup %2469  ;;  %v1308_v10 = vrot.slane %v2468_v8, 4 }
 0x330   : > { %v2472_v11 = vpop.eup %2471  ;;  %v1975_v12 = vpop.f32.mrb[4].mxu0  ;;  %v1320_v14 = vrot.slane %v2470_v9, 4 }
 0x331   : > { %v2474_v15 = vpop.eup %2473  ;;  %v1976_v16 = vpop.f32.mrb[5].mxu0  ;;  %v1314_v17 = vrot.slane %v2472_v11, 4  ;;  %v1309_v18 = vadd.f32 %v2468_v8, %v1308_v10 }
 0x332   : > { %v1977_v19 = vadd.f32 %v1976_v16, %v1975_v12  ;;  %v1326_v20 = vrot.slane %v2474_v15, 4  ;;  %v1321_v21 = vadd.f32 %v2470_v9, %v1320_v14 }
 0x333   : > { %v1315_v22 = vadd.f32 %v2472_v11, %v1314_v17  ;;  %v1310_v23 = vrot.slane %v1309_v18, 2 }
 0x334   : > { %v1271_v24 = vadd.f32 %v1977_v19, %v1056_v13  ;;  %v1327_v40 = vadd.f32 %v2474_v15, %v1326_v20  ;;  %v1322_v25 = vrot.slane %v1321_v21, 2 }
 0x335   : > { %v1316_v26 = vrot.slane %v1315_v22, 2  ;;  %v1311_v27 = vadd.f32 %v1310_v23, %v1309_v18 }
 0x336   : > { %v1278_v28 = vsub.f32 0.0, %v1271_v24  ;;  %v1328_v29 = vrot.slane %v1327_v40, 2  ;;  %v1323_v30 = vadd.f32 %v1322_v25, %v1321_v21 }
 0x337   : > { %v1317_v31 = vadd.f32 %v1316_v26, %v1315_v22  ;;  %v1312_v32 = vrot.slane %v1311_v27, 1 }
 0x338   : > { %v1287_v33 = vmul.f32 1.442695, %v1278_v28  ;;  %v1329_v34 = vadd.f32 %v1328_v29, %v1327_v40  ;;  %v1324_v37 = vrot.slane %v1323_v30, 1 }
 0x339   : > { %v1318_v39 = vrot.slane %v1317_v31, 1  ;;  %v1313_v41 = vadd.f32 %v1312_v32, %v1311_v27 }
 0x33a   : > { %2475 = vpow2.f32 %v1287_v33  ;;  %v1330_v42 = vrot.slane %v1329_v34, 1  ;;  %v1325_v43 = vadd.f32 %v1324_v37, %v1323_v30  ;;  %v3148_v37 = vld [vmem:[%s3257_s9 + $0x1] ss:$4 sm:$0x1f] }
 0x33b   : > { %v1319_v44 = vadd.f32 %v1318_v39, %v1317_v31  ;;  %v1338_v45 = vmul.f32 0.125, %v1313_v41 }
 0x33c   : > { %v1331_v46 = vadd.f32 %v1330_v42, %v1329_v34  ;;  %v1340_v48 = vmul.f32 0.125, %v1325_v43  ;;  %v3153_v43 = vld [vmem:[%s3257_s9 + $0x2] ss:$4 sm:$0x1f] }
 0x33d   : > { %v1339_v49 = vmul.f32 0.125, %v1319_v44  ;;  %v1343_v50 = vsub.f32 %v2468_v8, %v1338_v45  ;;  %v1407_v44 = vrot.slane %v3148_v37, %v2898_v47 }
 0x33e   : > { %v1341_v51 = vmul.f32 0.125, %v1331_v46  ;;  %v3133_v53 = vsub.f32 %v2470_v9, %v1340_v48  ;;  %v1411_v46 = vrot.slane %v3148_v37, %v2904_v52 }
 0x33f   : > { %v3135_v54 = vsub.f32 %v2472_v11, %v1339_v49  ;;  %v1348_v55 = vmul.f32 %v1343_v50, %v1343_v50  ;;  %v1415_v49 = vrot.slane %v3148_v37, %v3117_v36 }
 0x340   : > { %v3137_v56 = vsub.f32 %v2474_v15, %v1341_v51  ;;  %v1350_v57 = vmul.f32 %v3133_v53, %v3133_v53 }
 0x341   : > { %v1349_v58 = vmul.f32 %v3135_v54, %v3135_v54  ;;  %v1353_v59 = vrot.slane %v1348_v55, 4 }
 0x342   : > { %v1351_v60 = vmul.f32 %v3137_v56, %v3137_v56  ;;  %v1365_v61 = vrot.slane %v1350_v57, 4 }
 0x343   : > { %v1359_v62 = vrot.slane %v1349_v58, 4  ;;  %v1354_v63 = vadd.f32 %v1353_v59, %v1348_v55 }
 0x344   : > { %v2476_v0 = vpop.eup %2475  ;;  %v1371_v1 = vrot.slane %v1351_v60, 4  ;;  %v1366_v2 = vadd.f32 %v1365_v61, %v1350_v57  ;;  %v1419_v57 = vrot.slane %v3148_v37, %v3123_v38  ;;  %v1442_v61 = vrot.slane %v3153_v43, %v2904_v52 }
 0x345   : > { %v1293_v3 = vadd.f32 1.0, %v2476_v0  ;;  %v1360_v4 = vadd.f32 %v1359_v62, %v1349_v58  ;;  %v1355_v5 = vrot.slane %v1354_v63, 2 }
 0x346   : > { %v1372_v8 = vadd.f32 %v1371_v1, %v1351_v60  ;;  %v1367_v9 = vrot.slane %v1366_v2, 2  ;;  %v1438_v1 = vrot.slane %v3153_v43, %v2898_v47 }
 0x347   : > { %2477 = vrcp.f32 %v1293_v3  ;;  %v1361_v10 = vrot.slane %v1360_v4, 2  ;;  %v1356_v11 = vadd.f32 %v1355_v5, %v1354_v63 }
 0x348   : > { %v1373_v12 = vrot.slane %v1372_v8, 2  ;;  %v1368_v13 = vadd.f32 %v1367_v9, %v1366_v2 }
 0x349   : > { %v1362_v14 = vadd.f32 %v1361_v10, %v1360_v4  ;;  %v1357_v15 = vrot.slane %v1356_v11, 1  ;;  %v1531_v10 = vld [vmem:[%s3258_s10 + $0x210] sm:$0xff] }
 0x34a   : > { %v1374_v16 = vadd.f32 %v1373_v12, %v1372_v8  ;;  %v1369_v17 = vrot.slane %v1368_v13, 1 }
 0x34b   : > { %v1363_v18 = vrot.slane %v1362_v14, 1  ;;  %v1358_v19 = vadd.f32 %v1357_v15, %v1356_v11  ;;  %v1532_v11 = vld [vmem:[%s3258_s10 + $0x218] sm:$0xff]  ;;  %v1533_v15 = vld [vmem:[%s3258_s10 + $0x220] sm:$0xff] }
 0x34c   : > { %v1375_v20 = vrot.slane %v1374_v16, 1  ;;  %v1370_v21 = vadd.f32 %v1369_v17, %v1368_v13 }
 0x34d   : > { %v1364_v22 = vadd.f32 %v1363_v18, %v1362_v14  ;;  %v1383_v23 = vmul.f32 0.125, %v1358_v19 }
 0x34e   : > { %v1376_v24 = vadd.f32 %v1375_v20, %v1374_v16  ;;  %v1385_v40 = vmul.f32 0.125, %v1370_v21  ;;  %v1534_v16 = vld [vmem:[%s3258_s10 + $0x228] sm:$0xff]  ;;  %v1535_v20 = vld [vmem:[%s3258_s10 + $0x230] sm:$0xff]  ;;  %v1536_v21 = vld [vmem:[%s3258_s10 + $0x238] sm:$0xff] }
 0x34f   : > { %v1384_v25 = vmul.f32 0.125, %v1364_v22  ;;  %v1388_v26 = vadd.f32 1e-05, %v1383_v23  ;;  %v2395_v18 = vpack.c.bf16 %v1534_v16, %v1533_v15  ;;  %v2398_v23 = vpack.c.bf16 %v1536_v21, %v1535_v20 }
 0x350   : > { %v1386_v27 = vmul.f32 0.125, %v1376_v24  ;;  %v1390_v28 = vadd.f32 1e-05, %v1385_v40  ;;  %v1538_v40 = vld [vmem:[%s3258_s10 + $0x248] sm:$0xff] }
 0x351   : > { %v2478_v29 = vpop.eup %2477  ;;  %v1389_v30 = vadd.f32 1e-05, %v1384_v25  ;;  %2479 = vrsqrt.f32 %v1388_v26 }
 0x352   : > { %v1391_v31 = vadd.f32 1e-05, %v1386_v27  ;;  %2481 = vrsqrt.f32 %v1390_v28  ;;  %v1332_v32 = vrot.slane %v2478_v29, 4  ;;  %v1539_v28 = vld [vmem:[%s3258_s10 + $0x250] sm:$0xff] }
 0x353   : > { %2483 = vrsqrt.f32 %v1389_v30 }
 0x354   : > { %2485 = vrsqrt.f32 %v1391_v31  ;;  %v1333_v33 = vadd.f32 %v2478_v29, %v1332_v32  ;;  %v1541_v31 = vld [vmem:[%s3258_s10 + $0x260] sm:$0xff]  ;;  %v1542_v32 = vld [vmem:[%s3258_s10 + $0x268] sm:$0xff] }
 0x356   : > { %v1334_v34 = vrot.slane %v1333_v33, 2 }
 0x358   : > { %v1335_v39 = vadd.f32 %v1334_v34, %v1333_v33  ;;  %v2407_v33 = vpack.c.bf16 %v1542_v32, %v1541_v31  ;;  %v1543_v34 = vld [vmem:[%s3258_s10 + $0x270] sm:$0xff] }
 0x35a   : > { %v1336_v41 = vrot.slane %v1335_v39, 1 }
 0x35b   : > { %v2480_v42 = vpop.eup %2479 }
 0x35c   : > { %v2482_v45 = vpop.eup %2481  ;;  %v1398_v48 = vmul.f32 %v2480_v42, %v1343_v50  ;;  %v1337_v51 = vadd.f32 %v1336_v41, %v1335_v39  ;;  %v1450_v50 = vrot.slane %v3153_v43, %v3123_v38  ;;  %v1544_v39 = vld [vmem:[%s3258_s10 + $0x278] sm:$0xff]  ;;  %v1423_v41 = vrot.slane %v3148_v37, %v3130_v6  ;;  %v1938_v37 = vld [vmem:[%s3259_s11] ss:$0 sm:$0xff] }
 0x35d   : > { %v2484_v55 = vpop.eup %2483  ;;  %v1400_v58 = vmul.f32 %v2482_v45, %v3133_v53  ;;  %v1529_v53 = vld [vmem:[%s3258_s10 + $0x200] sm:$0xff] }
 0x35e   : > { %v2486_v59 = vpop.eup %2485  ;;  %v1399_v60 = vmul.f32 %v2484_v55, %v3135_v54  ;;  %v1342_v62 = vmul.f32 0.125, %v1337_v51  ;;  %v1429_v0 = vmul.f32 %v1407_v44, %v1398_v48  ;;  %v1530_v54 = vld [vmem:[%s3258_s10 + $0x208] sm:$0xff]  ;;  %v2410_v44 = vpack.c.bf16 %v1544_v39, %v1543_v34  ;;  %v464_v51 = vld [vmem:[%s2671_s25] sm:$0xff]  ;;  %s2546_s25 = smov 6  }
 0x35f   : > { %v1401_v63 = vmul.f32 %v2486_v59, %v3137_v56  ;;  %v1431_v52 = vmul.f32 %v1415_v49, %v1400_v58  ;;  %v1446_v56 = vrot.slane %v3153_v43, %v3117_v36  ;;  %v2389_v5 = vpack.c.bf16 %v1530_v54, %v1529_v53  ;;  %1816 = vrot.lane.b32.xlu1 %v464_v51, %s2545_s15 }
 0x360   : > { %v1430_v2 = vmul.f32 %v1411_v46, %v1399_v60  ;;  %v1347_v3 = vsub.f32 %v2478_v29, %v1342_v62  ;;  %v1460_v47 = vadd.f32 %v1438_v1, %v1429_v0  ;;  %v2392_v36 = vpack.c.bf16 %v1532_v11, %v1531_v10  ;;  %v1540_v29 = vld [vmem:[%s3258_s10 + $0x258] sm:$0xff] }
 0x361   : > { %v1432_v4 = vmul.f32 %v1419_v57, %v1401_v63  ;;  %v1462_v12 = vadd.f32 %v1446_v56, %v1431_v52  ;;  %v2404_v30 = vpack.c.bf16 %v1540_v29, %v1539_v28  ;;  %v1454_v46 = vrot.slane %v3153_v43, %v3130_v6 }
 0x362   : > { %v1461_v38 = vadd.f32 %v1442_v61, %v1430_v2  ;;  %v1352_v8 = vmul.f32 %v1347_v3, %v1347_v3 }
 0x363   : > { %v1463_v9 = vadd.f32 %v1450_v50, %v1432_v4 }
 0x364   : > { %1616 = vmatprep.mubr.f32.mxu0 %v1461_v38  ;;  %v1377_v13 = vrot.slane %v1352_v8, 4 }
 0x365   : > { %1686 = vmatprep.mubr.f32.mxu1 %v1463_v9  ;;  %1617 = vmatmul.mubr.f32.vlgmr.msra.gmra.mrb[6].mxu0 %v1460_v47 }
 0x366   : > { %1687 = vmatmul.mubr.f32.vlgmr.msra.gmra.mrb[6].mxu1 %v1462_v12  ;;  %2390 = vmatpush3.bf16.msra.mxu0 %v2389_v5  ;;  %v1378_v14 = vadd.f32 %v1377_v13, %v1352_v8 }
 0x367   : > { %2391 = vmatprep.subr.bf16.mxu0 %v2543_v35  ;;  %2097 = vmatprep.mubr.msk.f32.mxu0 %vm2544_vm5, %v2542_v7  ;;  %v1537_v7 = vld [vmem:[%s3258_s10 + $0x240] sm:$0xff] }
 0x368   : > { %v1379_v17 = vrot.slane %v1378_v14, 2  ;;  %v2401_v26 = vpack.c.bf16 %v1538_v40, %v1537_v7 }
 0x36a   : > { %2393 = vmatpush3.bf16.msra.mxu0 %v2392_v36  ;;  %v1380_v19 = vadd.f32 %v1379_v17, %v1378_v14 }
 0x36b   : > { %2394 = vmatprep.subr.bf16.mxu0 %v2543_v35 }
 0x36c   : > { %v1381_v22 = vrot.slane %v1380_v19, 1 }
 0x36e   : > { %2396 = vmatpush3.bf16.msra.mxu0 %v2395_v18  ;;  %v1382_v24 = vadd.f32 %v1381_v22, %v1380_v19 }
 0x36f   : > { %2397 = vmatprep.subr.bf16.mxu0 %v2543_v35 }
 0x370   : > { %v1387_v25 = vmul.f32 0.125, %v1382_v24 }
 0x372   : > { %2399 = vmatpush3.bf16.msra.mxu0 %v2398_v23  ;;  %v1392_v27 = vadd.f32 1e-05, %v1387_v25 }
 0x373   : > { %2400 = vmatprep.subr.bf16.mxu0 %v2543_v35 }
 0x374   : > { %2487 = vrsqrt.f32 %v1392_v27 }
 0x376   : > { %2402 = vmatpush3.bf16.msra.mxu0 %v2401_v26 }
 0x377   : > { %2403 = vmatprep.subr.bf16.mxu0 %v2543_v35 }
 0x37a   : > { %2405 = vmatpush3.bf16.msra.mxu0 %v2404_v30 }
 0x37b   : > { %2406 = vmatprep.subr.bf16.mxu0 %v2543_v35 }
 0x37e   : > { %v2488_v42 = vpop.eup %2487  ;;  %2408 = vmatpush3.bf16.msra.mxu0 %v2407_v33 }
 0x37f   : > { %2409 = vmatprep.subr.bf16.mxu0 %v2543_v35  ;;  %v1402_v45 = vmul.f32 %v2488_v42, %v1347_v3 }
 0x381   : > { %v1433_v48 = vmul.f32 %v1423_v41, %v1402_v45 }
 0x382   : > { %2411 = vmatpush3.bf16.msra.mxu0 %v2410_v44 }
 0x383   : > { %v1464_v49 = vadd.f32 %v1454_v46, %v1433_v48 }
 0x385   : > { %2098 = vmatmul.mubr.f32.vlgmr.msra.gmra.mrb[8].mxu0 %v1464_v49 }
 0x3d1   : > { %v1817_v11 = vpop.permute.xlu1 %1816 }
 0x438   : > { %v2010_v55 = vpop.f32.mrb[6].mxu0 }
 0x439   : > { %v2045_v57 = vpop.f32.mrb[6].mxu1  ;;  %v2011_v58 = vpop.f32.mrb[7].mxu0 }
 0x43a   : > { %v2012_v59 = vadd.f32 %v2011_v58, %v2010_v55  ;;  %v2046_v35 = vpop.f32.mrb[7].mxu1 }
 0x43b   : > { %v2047_v60 = vadd.f32 %v2046_v35, %v2045_v57 }
 0x43c   : > { %v1619_v61 = vadd.f32 %v2012_v59, %v1938_v37 }
 0x43e   : > { %v1689_v62 = vadd.f32 %v2047_v60, %v1619_v61 }
 0x458   : > { %v1758_v6 = vpop.f32.mrb[8].mxu0 }
 0x459   : > { %v1759_v43 = vadd.f32 %v1758_v6, %v1689_v62  ;;  %v2099_v63 = vpop.f32.mrb[9].mxu0 }
 0x45b   : > { %v1763_v50 = vmin.f32 %v1759_v43, 20.0  ;;  %vm1762_vm6 = vcmp.gt.f32.partialorder %v1759_v43, 20.0 }
 0x45d   : > { %v1764_v0 = vmul.f32 1.442695, %v1763_v50 }
 0x45f   : > { %2489 = vpow2.f32 %v1764_v0 }
 0x469   : > { %v2490_v1 = vpop.eup %2489 }
 0x46a   : > { %v1766_v53 = vadd.f32 1.0, %v2490_v1 }
 0x46c   : > { %2491 = vlog2.f32 %v1766_v53 }
 0x476   : > { %v2492_v54 = vpop.eup %2491 }
 0x477   : > { %v1768_v2 = vmul.f32 0.6931472, %v2492_v54 }
 0x479   : > { %v1769_v52 = vsel %vm1762_vm6, %v1759_v43, %v1768_v2 }
 0x47a   : > { %v1770_v56 = vmul.f32 %v1769_v52, %v1769_v52  ;;  %2493 = vrcp.f32 %v1769_v52 }
 0x47c   : > { %1772 = vrot.lane.b32.xlu0 %v1770_v56, %s2546_s25 }
 0x480   : > { %1781 = vrot.lane.b32.xlu0 %v1770_v56, %s2547_s19 }
 0x484   : > { %v2494_v3 = vpop.eup %2493  ;;  %1777 = vrot.lane.b32.xlu0 %v1770_v56, %s2548_s20 }
 0x485   : > { %1811 = vrot.lane.b32.xlu1 %v2494_v3, %s2549_s23 }
 0x4ee   : > { %v1773_v4 = vpop.permute.xlu0 %1772 }
 0x4ef   : > { %v1775_v38 = vadd.f32 %v1773_v4, %v1770_v56  ;;  %v1795_v9 = vmul.f32 %v1773_v4, %v1770_v56 }
 0x4f1   : > { %2495 = vrcp.f32 %v1775_v38 }
 0x4f2   : > { %v1782_v5 = vpop.permute.xlu0 %1781 }
 0x4f3   : > { %v1784_v8 = vmul.f32 %v1782_v5, %v1759_v43 }
 0x4f5   : > { %1786 = vrot.lane.b32.xlu1 %v1784_v8, %s2550_s27 }
 0x4f6   : > { %v1778_v19 = vpop.permute.xlu0 %1777 }
 0x4f7   : > { %v1812_v16 = vpop.permute.xlu1 %1811  ;;  %v1780_v21 = vmul.f32 %v1778_v19, %v1759_v43 }
 0x4f9   : > { %1807 = vrot.lane.b32.xlu1 %v2494_v3, %s2551_s22 }
 0x4fb   : > { %v2496_v47 = vpop.eup %2495 }
 0x4fc   : > { %v1796_v10 = vmul.f32 %v2496_v47, %v1795_v9  ;;  %1791 = vrot.lane.b32.xlu0 %v2496_v47, %s2548_s20 }
 0x4fe   : > { %2497 = vrsqrt.f32 %v1796_v10  ;;  %vm1799_vm7 = vcmp.eq.f32.partialorder %v1796_v10, inf  ;;  %v1802_v36 = vand.u32 2147483648, %v1796_v10  ;;  %vm1801_vm8 = vcmp.eq.f32.partialorder %v1796_v10, 0.0 }
 0x508   : > { %v2498_v12 = vpop.eup %2497 }
 0x509   : > { %v1798_v13 = vmul.f32 %v2498_v12, %v1796_v10 }
 0x50b   : > { %v1800_v14 = vsel %vm1799_vm7, %v1796_v10, %v1798_v13 }
 0x50c   : > { %v1803_v15 = vsel %vm1801_vm8, %v1802_v36, %v1800_v14 }
 0x50d   : > { %v1819_v17 = vmul.f32 %v1817_v11, %v1803_v15  ;;  %v1814_v18 = vmul.f32 %v1812_v16, %v1803_v15 }
 0x50f   : > { %1821 = vrot.lane.b32.xlu0 %v1819_v17, %s2548_s20  ;;  %1829 = vrot.lane.b32.xlu1 %v1814_v18, %s2548_s20 }
 0x567   : > { %v1787_v20 = vpop.permute.xlu1 %1786 }
 0x568   : > { %v1789_v22 = vadd.f32 %v1787_v20, %v1780_v21 }
 0x56b   : > { %v1808_v40 = vpop.permute.xlu1 %1807 }
 0x56e   : > { %v1792_v23 = vpop.permute.xlu0 %1791 }
 0x56f   : > { %v1794_v24 = vmul.f32 %v1792_v23, %v1789_v22 }
 0x571   : > { %v1805_v7 = vsub.f32 %v1794_v24, %v1759_v43 }
 0x573   : > { %v1810_v25 = vmul.f32 %v1808_v40, %v1805_v7 }
 0x575   : > { %1939 = vst.msk [vmem:[%s2676_s16 + $0x8] sm:$0xff] %vm552_vm3, %v1810_v25 }
 0x581   : > { %v1830_v26 = vpop.permute.xlu1 %1829  ;;  %v1822_v27 = vpop.permute.xlu0 %1821 }
 0x582   : > { %1940 = vst.msk [vmem:[%s2676_s16 + $0x10] sm:$0xff] %vm552_vm3, %v1830_v26  ;;  %v1824_v28 = vadd.f32 %v1822_v27, %v1794_v24 }
 0x584   : > { %1825 = vst.msk [vmem:[%s2676_s16] sm:$0xff] %vm552_vm3, %v1824_v28  ;;  %1834 = vst.msk [vmem:[#allocation2] sm:$0xff] %vm552_vm3, %v1824_v28 }
 0x585 PF: > { %s23_s21 = sadd.s32 1, %s2537_s21  }
 0x586   : > { %p20_p4 = scmp.ge.s32.totalorder %s23_s21, 6  }
 0x588   :  { %22 = sbr.rel (!%p20_p4) target bundleno = 1 (0x1), region = 117 }
 0x58f   :  { %1856 = vsyncpa [#allocation4], 1 }
 0x590   :  { %1858 = vsyncpa [#allocation4 + $0x1], 1 }

</bundles_post_ra>
